<compile_context>
chip_gen: v6e
topology: v6e:2x2x1
jax: 0.10.0
libtpu: 0.0.40
codegen_flags: <defaults>
</compile_context>

<pallas_src>
import jax
import jax.numpy as jnp
from jax.experimental import pallas as pl
from jax.experimental.pallas import tpu as pltpu


def _linear_c_kernel(urt_ref, uit_ref, uhs_ref, uts_ref, xr_ref, xi_ref, or_ref, oi_ref):
    """One grid step processes T matrices.

    Inputs (resident, constant across the grid):
      urt = U_real^T, uit = U_imag^T           (E, E)
      uhs = urt - uit  (sum of U^H planes)     (E, E)
      uts = urt + uit  (sum of U^T planes)     (E, E)
    Inputs (per step): xr, xi row-stacked slabs (T*E, E), row block t = x[t].
    Outputs: or, oi column-stacked slabs (E, T*E), col block t = out[t] = U x[t] U^H.
    """
    E = urt_ref.shape[0]
    TE = xr_ref.shape[0]
    T = TE // E
    f32 = jnp.float32

    urt = urt_ref[...]
    uit = uit_ref[...]
    uhs = uhs_ref[...]
    uts = uts_ref[...]
    xr = xr_ref[...]
    xi = xi_ref[...]

    # ---- stage 1: y[t] = x[t] @ U^H, computed on the whole row-stacked slab (M = T*E).
    # U^H = urt + i*(-uit).  Karatsuba (3 matmuls):
    t1 = jnp.dot(xr, urt, preferred_element_type=f32)        # xr @ Re(U^H)
    t2m = jnp.dot(xi, uit, preferred_element_type=f32)       # = -(xi @ Im(U^H))
    t3 = jnp.dot(xr + xi, uhs, preferred_element_type=f32)   # (xr+xi) @ (Re+Im)(U^H)
    yr = t1 + t2m
    yi = t3 - t1 + t2m

    # ---- per-block transpose of the intermediate: row block t becomes y[t]^T.
    # (Static slices + 2-D transposes + sublane-axis concat: all canonical Mosaic ops.)
    def _block_t(slab):
        blocks = [slab[t * E:(t + 1) * E, :].T for t in range(T)]
        return blocks[0] if T == 1 else jnp.concatenate(blocks, axis=0)

    yrT = _block_t(yr)
    yiT = _block_t(yi)

    # ---- stage 2: out[t]^T = y[t]^T @ U^T, again one big-M matmul per real product.
    # U^T = urt + i*uit.  Karatsuba:
    s1 = jnp.dot(yrT, urt, preferred_element_type=f32)
    s2 = jnp.dot(yiT, uit, preferred_element_type=f32)
    s3 = jnp.dot(yrT + yiT, uts, preferred_element_type=f32)
    zr = s1 - s2            # row block t = Re(out[t]^T)
    zi = s3 - s1 - s2       # row block t = Im(out[t]^T)

    # ---- lane-dense store: full 2-D transpose turns row-stacked out^T into
    # column-stacked out, last dim T*E (multiple of 128) -> unmasked vector stores.
    or_ref[...] = zr.T
    oi_ref[...] = zi.T


def _pick_block_t(G, E):
    """Matrices per grid step: divisor of G with T*E >= 128 when possible, prefer >= 2
    grid steps (v7x megacore), and keep each slab well under ~2 MiB per plane."""
    t_min = max(1, (128 + E - 1) // E)
    t_cap = max(t_min, (2 * 1024 * 1024) // (E * E * 4))
    divs = [d for d in range(1, G + 1) if G % d == 0]
    cands = [d for d in divs if t_min <= d <= t_cap]
    if not cands:
        cands = [d for d in divs if d <= t_cap] or [G]
    multi = [d for d in cands if G // d >= 2]
    return max(multi) if multi else max(cands)


def linear_c_pallas(unitary, x):
    """unitary: (E, E, 2) float32 (real/imag stacked on last dim, as in the module).
       x: (B, S, E, E) complex64.  Returns (B, S, E, E) complex64 = U @ x @ U^H."""
    E = unitary.shape[0]
    B, S = x.shape[0], x.shape[1]
    G = B * S
    T = _pick_block_t(G, E)
    n_steps = G // T

    ur = unitary[:, :, 0].astype(jnp.float32)
    ui = unitary[:, :, 1].astype(jnp.float32)
    urt = ur.T                      # Re(U^T) = Re(U^H)
    uit = ui.T                      # Im(U^T) = -Im(U^H)
    uhs = urt - uit                 # Re(U^H) + Im(U^H)
    uts = urt + uit                 # Re(U^T) + Im(U^T)

    # Row-stacked planar layout: row block g = x[g]  (pure reshape, no transpose).
    xr = jnp.real(x).astype(jnp.float32).reshape(G * E, E)
    xi = jnp.imag(x).astype(jnp.float32).reshape(G * E, E)

    u_spec = pl.BlockSpec((E, E), lambda g: (0, 0))          # resident, fetched once
    x_spec = pl.BlockSpec((T * E, E), lambda g: (g, 0))      # row-stacked input slab
    o_spec = pl.BlockSpec((E, T * E), lambda g: (0, g))      # lane-dense output slab

    out_r, out_i = pl.pallas_call(
        _linear_c_kernel,
        out_shape=(jax.ShapeDtypeStruct((E, G * E), jnp.float32),
                   jax.ShapeDtypeStruct((E, G * E), jnp.float32)),
        grid_spec=pltpu.PrefetchScalarGridSpec(
            num_scalar_prefetch=0,
            grid=(n_steps,),
            in_specs=[u_spec, u_spec, u_spec, u_spec, x_spec, x_spec],
            out_specs=[o_spec, o_spec],
        ),
        compiler_params=pltpu.CompilerParams(
            dimension_semantics=("parallel",)),
    )(urt, uit, uhs, uts, xr, xi)

    # (E, G*E) column-stacked out[g]  ->  (G, E, E); fuse with complex recombination.
    out_r = out_r.reshape(E, G, E).transpose(1, 0, 2)
    out_i = out_i.reshape(E, G, E).transpose(1, 0, 2)
    out = out_r.astype(jnp.complex64) + 1j * out_i.astype(jnp.complex64)
    return out.reshape(B, S, E, E)


def _reference(unitary, x):
    U = unitary[:, :, 0].astype(jnp.complex64) + 1j * unitary[:, :, 1].astype(jnp.complex64)
    U_H = jnp.conj(U).T
    return jnp.matmul(jnp.matmul(U, x), U_H)


if __name__ == "__main__":
    embed_dim, batch_size, seq_len = 32, 2, 8

    # Parameter init exactly as in linear_c.__init__: stack([eye, zeros], dim=-1)
    unitary = jnp.stack(
        [jnp.eye(embed_dim, dtype=jnp.float32),
         jnp.zeros((embed_dim, embed_dim), dtype=jnp.float32)], axis=-1)

    key = jax.random.PRNGKey(0)
    kr, ki, kp = jax.random.split(key, 3)
    x = (jax.random.normal(kr, (batch_size, seq_len, embed_dim, embed_dim), jnp.float32)
         + 1j * jax.random.normal(ki, (batch_size, seq_len, embed_dim, embed_dim), jnp.float32)
         ).astype(jnp.complex64)

    # Run with the module's default (identity) unitary.
    out = jax.block_until_ready(linear_c_pallas(unitary, x))
    ref = _reference(unitary, x)
    assert jnp.allclose(out, ref, atol=1e-4, rtol=1e-4)

    # Also exercise the imaginary-part matmul paths with a perturbed parameter.
    unitary2 = unitary + 0.05 * jax.random.normal(kp, unitary.shape, jnp.float32)
    out2 = jax.block_until_ready(linear_c_pallas(unitary2, x))
    ref2 = _reference(unitary2, x)
    assert jnp.allclose(out2, ref2, atol=1e-3, rtol=1e-3)

    print("KERNEL_OK")
</pallas_src>

<mosaic_0001>
module attributes {stable_mosaic.version = 11 : i64} {
  func.func @_linear_c_kernel(%arg0: i32, %arg1: memref<32x32xf32, #tpu.memory_space<vmem>>, %arg2: memref<32x32xf32, #tpu.memory_space<vmem>>, %arg3: memref<32x32xf32, #tpu.memory_space<vmem>>, %arg4: memref<32x32xf32, #tpu.memory_space<vmem>>, %arg5: memref<256x32xf32, #tpu.memory_space<vmem>>, %arg6: memref<256x32xf32, #tpu.memory_space<vmem>>, %arg7: memref<32x256xf32, #tpu.memory_space<vmem>>, %arg8: memref<32x256xf32, #tpu.memory_space<vmem>>) attributes {dimension_semantics = [#tpu.dimension_semantics<parallel>], iteration_bounds = array<i64: 2>, scalar_prefetch = 0 : i64, scratch_operands = 0 : i64, tpu.core_type = #tpu.core_type<tc>, window_params = [{pipeline_mode = #tpu.pipeline_mode<synchronous>, transform_indices = @transform_0, window_bounds = array<i64: 32, 32>}, {pipeline_mode = #tpu.pipeline_mode<synchronous>, transform_indices = @transform_1, window_bounds = array<i64: 32, 32>}, {pipeline_mode = #tpu.pipeline_mode<synchronous>, transform_indices = @transform_2, window_bounds = array<i64: 32, 32>}, {pipeline_mode = #tpu.pipeline_mode<synchronous>, transform_indices = @transform_3, window_bounds = array<i64: 32, 32>}, {transform_indices = @transform_4, window_bounds = array<i64: 256, 32>}, {transform_indices = @transform_5, window_bounds = array<i64: 256, 32>}, {transform_indices = @transform_6, window_bounds = array<i64: 32, 256>}, {transform_indices = @transform_7, window_bounds = array<i64: 32, 256>}]} {
    %c0 = arith.constant 0 : index
    %c0_0 = arith.constant 0 : index
    %0 = vector.load %arg1[%c0, %c0_0] : memref<32x32xf32, #tpu.memory_space<vmem>>, vector<32x32xf32>
    %c0_1 = arith.constant 0 : index
    %c0_2 = arith.constant 0 : index
    %1 = vector.load %arg2[%c0_1, %c0_2] : memref<32x32xf32, #tpu.memory_space<vmem>>, vector<32x32xf32>
    %c0_3 = arith.constant 0 : index
    %c0_4 = arith.constant 0 : index
    %2 = vector.load %arg3[%c0_3, %c0_4] : memref<32x32xf32, #tpu.memory_space<vmem>>, vector<32x32xf32>
    %c0_5 = arith.constant 0 : index
    %c0_6 = arith.constant 0 : index
    %3 = vector.load %arg4[%c0_5, %c0_6] : memref<32x32xf32, #tpu.memory_space<vmem>>, vector<32x32xf32>
    %c0_7 = arith.constant 0 : index
    %c0_8 = arith.constant 0 : index
    %4 = vector.load %arg5[%c0_7, %c0_8] : memref<256x32xf32, #tpu.memory_space<vmem>>, vector<256x32xf32>
    %c0_9 = arith.constant 0 : index
    %c0_10 = arith.constant 0 : index
    %5 = vector.load %arg6[%c0_9, %c0_10] : memref<256x32xf32, #tpu.memory_space<vmem>>, vector<256x32xf32>
    %cst = arith.constant dense<0.000000e+00> : vector<256x32xf32>
    %6 = tpu.matmul %4, %0, %cst {dimension_numbers = #tpu.dot_dimension_numbers<[1], [0], [0], [1], [0, 0, 1, 1], [], []>} : vector<256x32xf32>, vector<32x32xf32>, vector<256x32xf32> -> vector<256x32xf32>
    %cst_11 = arith.constant dense<0.000000e+00> : vector<256x32xf32>
    %7 = tpu.matmul %5, %1, %cst_11 {dimension_numbers = #tpu.dot_dimension_numbers<[1], [0], [0], [1], [0, 0, 1, 1], [], []>} : vector<256x32xf32>, vector<32x32xf32>, vector<256x32xf32> -> vector<256x32xf32>
    %8 = arith.addf %4, %5 : vector<256x32xf32>
    %cst_12 = arith.constant dense<0.000000e+00> : vector<256x32xf32>
    %9 = tpu.matmul %8, %2, %cst_12 {dimension_numbers = #tpu.dot_dimension_numbers<[1], [0], [0], [1], [0, 0, 1, 1], [], []>} : vector<256x32xf32>, vector<32x32xf32>, vector<256x32xf32> -> vector<256x32xf32>
    %10 = arith.addf %6, %7 : vector<256x32xf32>
    %11 = arith.subf %9, %6 : vector<256x32xf32>
    %12 = arith.addf %11, %7 : vector<256x32xf32>
    %13 = vector.extract_strided_slice %10 {offsets = [0, 0], sizes = [32, 32], strides = [1, 1]} : vector<256x32xf32> to vector<32x32xf32>
    %14 = tpu.transpose %13, [1, 0] : vector<32x32xf32> -> vector<32x32xf32>
    %15 = vector.extract_strided_slice %10 {offsets = [32, 0], sizes = [32, 32], strides = [1, 1]} : vector<256x32xf32> to vector<32x32xf32>
    %16 = tpu.transpose %15, [1, 0] : vector<32x32xf32> -> vector<32x32xf32>
    %17 = vector.extract_strided_slice %10 {offsets = [64, 0], sizes = [32, 32], strides = [1, 1]} : vector<256x32xf32> to vector<32x32xf32>
    %18 = tpu.transpose %17, [1, 0] : vector<32x32xf32> -> vector<32x32xf32>
    %19 = vector.extract_strided_slice %10 {offsets = [96, 0], sizes = [32, 32], strides = [1, 1]} : vector<256x32xf32> to vector<32x32xf32>
    %20 = tpu.transpose %19, [1, 0] : vector<32x32xf32> -> vector<32x32xf32>
    %21 = vector.extract_strided_slice %10 {offsets = [128, 0], sizes = [32, 32], strides = [1, 1]} : vector<256x32xf32> to vector<32x32xf32>
    %22 = tpu.transpose %21, [1, 0] : vector<32x32xf32> -> vector<32x32xf32>
    %23 = vector.extract_strided_slice %10 {offsets = [160, 0], sizes = [32, 32], strides = [1, 1]} : vector<256x32xf32> to vector<32x32xf32>
    %24 = tpu.transpose %23, [1, 0] : vector<32x32xf32> -> vector<32x32xf32>
    %25 = vector.extract_strided_slice %10 {offsets = [192, 0], sizes = [32, 32], strides = [1, 1]} : vector<256x32xf32> to vector<32x32xf32>
    %26 = tpu.transpose %25, [1, 0] : vector<32x32xf32> -> vector<32x32xf32>
    %27 = vector.extract_strided_slice %10 {offsets = [224, 0], sizes = [32, 32], strides = [1, 1]} : vector<256x32xf32> to vector<32x32xf32>
    %28 = tpu.transpose %27, [1, 0] : vector<32x32xf32> -> vector<32x32xf32>
    %29 = tpu.concatenate %14, %16, %18, %20, %22, %24, %26, %28 in 0 : vector<32x32xf32>, vector<32x32xf32>, vector<32x32xf32>, vector<32x32xf32>, vector<32x32xf32>, vector<32x32xf32>, vector<32x32xf32>, vector<32x32xf32> -> vector<256x32xf32>
    %30 = vector.extract_strided_slice %12 {offsets = [0, 0], sizes = [32, 32], strides = [1, 1]} : vector<256x32xf32> to vector<32x32xf32>
    %31 = tpu.transpose %30, [1, 0] : vector<32x32xf32> -> vector<32x32xf32>
    %32 = vector.extract_strided_slice %12 {offsets = [32, 0], sizes = [32, 32], strides = [1, 1]} : vector<256x32xf32> to vector<32x32xf32>
    %33 = tpu.transpose %32, [1, 0] : vector<32x32xf32> -> vector<32x32xf32>
    %34 = vector.extract_strided_slice %12 {offsets = [64, 0], sizes = [32, 32], strides = [1, 1]} : vector<256x32xf32> to vector<32x32xf32>
    %35 = tpu.transpose %34, [1, 0] : vector<32x32xf32> -> vector<32x32xf32>
    %36 = vector.extract_strided_slice %12 {offsets = [96, 0], sizes = [32, 32], strides = [1, 1]} : vector<256x32xf32> to vector<32x32xf32>
    %37 = tpu.transpose %36, [1, 0] : vector<32x32xf32> -> vector<32x32xf32>
    %38 = vector.extract_strided_slice %12 {offsets = [128, 0], sizes = [32, 32], strides = [1, 1]} : vector<256x32xf32> to vector<32x32xf32>
    %39 = tpu.transpose %38, [1, 0] : vector<32x32xf32> -> vector<32x32xf32>
    %40 = vector.extract_strided_slice %12 {offsets = [160, 0], sizes = [32, 32], strides = [1, 1]} : vector<256x32xf32> to vector<32x32xf32>
    %41 = tpu.transpose %40, [1, 0] : vector<32x32xf32> -> vector<32x32xf32>
    %42 = vector.extract_strided_slice %12 {offsets = [192, 0], sizes = [32, 32], strides = [1, 1]} : vector<256x32xf32> to vector<32x32xf32>
    %43 = tpu.transpose %42, [1, 0] : vector<32x32xf32> -> vector<32x32xf32>
    %44 = vector.extract_strided_slice %12 {offsets = [224, 0], sizes = [32, 32], strides = [1, 1]} : vector<256x32xf32> to vector<32x32xf32>
    %45 = tpu.transpose %44, [1, 0] : vector<32x32xf32> -> vector<32x32xf32>
    %46 = tpu.concatenate %31, %33, %35, %37, %39, %41, %43, %45 in 0 : vector<32x32xf32>, vector<32x32xf32>, vector<32x32xf32>, vector<32x32xf32>, vector<32x32xf32>, vector<32x32xf32>, vector<32x32xf32>, vector<32x32xf32> -> vector<256x32xf32>
    %cst_13 = arith.constant dense<0.000000e+00> : vector<256x32xf32>
    %47 = tpu.matmul %29, %0, %cst_13 {dimension_numbers = #tpu.dot_dimension_numbers<[1], [0], [0], [1], [0, 0, 1, 1], [], []>} : vector<256x32xf32>, vector<32x32xf32>, vector<256x32xf32> -> vector<256x32xf32>
    %cst_14 = arith.constant dense<0.000000e+00> : vector<256x32xf32>
    %48 = tpu.matmul %46, %1, %cst_14 {dimension_numbers = #tpu.dot_dimension_numbers<[1], [0], [0], [1], [0, 0, 1, 1], [], []>} : vector<256x32xf32>, vector<32x32xf32>, vector<256x32xf32> -> vector<256x32xf32>
    %49 = arith.addf %29, %46 : vector<256x32xf32>
    %cst_15 = arith.constant dense<0.000000e+00> : vector<256x32xf32>
    %50 = tpu.matmul %49, %3, %cst_15 {dimension_numbers = #tpu.dot_dimension_numbers<[1], [0], [0], [1], [0, 0, 1, 1], [], []>} : vector<256x32xf32>, vector<32x32xf32>, vector<256x32xf32> -> vector<256x32xf32>
    %51 = arith.subf %47, %48 : vector<256x32xf32>
    %52 = arith.subf %50, %47 : vector<256x32xf32>
    %53 = arith.subf %52, %48 : vector<256x32xf32>
    %54 = tpu.transpose %51, [1, 0] : vector<256x32xf32> -> vector<32x256xf32>
    %c0_16 = arith.constant 0 : index
    %c0_17 = arith.constant 0 : index
    %55 = vector.load %arg7[%c0_16, %c0_17] : memref<32x256xf32, #tpu.memory_space<vmem>>, vector<32x256xf32>
    tpu.vector_store %arg7[%c0_16, %c0_17], %54 {strides = array<i32>} : memref<32x256xf32, #tpu.memory_space<vmem>>, vector<32x256xf32>,
    %56 = tpu.transpose %53, [1, 0] : vector<256x32xf32> -> vector<32x256xf32>
    %c0_18 = arith.constant 0 : index
    %c0_19 = arith.constant 0 : index
    %57 = vector.load %arg8[%c0_18, %c0_19] : memref<32x256xf32, #tpu.memory_space<vmem>>, vector<32x256xf32>
    tpu.vector_store %arg8[%c0_18, %c0_19], %56 {strides = array<i32>} : memref<32x256xf32, #tpu.memory_space<vmem>>, vector<32x256xf32>,
    return
  }
  func.func @transform_0(%arg0: i32) -> (i32, i32) {
    %c0_i32 = arith.constant 0 : i32
    %c0_i32_0 = arith.constant 0 : i32
    %c0_i32_1 = arith.constant 0 : i32
    return %c0_i32, %c0_i32_0 : i32, i32
  }
  func.func @transform_1(%arg0: i32) -> (i32, i32) {
    %c0_i32 = arith.constant 0 : i32
    %c0_i32_0 = arith.constant 0 : i32
    %c0_i32_1 = arith.constant 0 : i32
    return %c0_i32, %c0_i32_0 : i32, i32
  }
  func.func @transform_2(%arg0: i32) -> (i32, i32) {
    %c0_i32 = arith.constant 0 : i32
    %c0_i32_0 = arith.constant 0 : i32
    %c0_i32_1 = arith.constant 0 : i32
    return %c0_i32, %c0_i32_0 : i32, i32
  }
  func.func @transform_3(%arg0: i32) -> (i32, i32) {
    %c0_i32 = arith.constant 0 : i32
    %c0_i32_0 = arith.constant 0 : i32
    %c0_i32_1 = arith.constant 0 : i32
    return %c0_i32, %c0_i32_0 : i32, i32
  }
  func.func @transform_4(%arg0: i32) -> (i32, i32) {
    %c0_i32 = arith.constant 0 : i32
    %c0_i32_0 = arith.constant 0 : i32
    return %arg0, %c0_i32 : i32, i32
  }
  func.func @transform_5(%arg0: i32) -> (i32, i32) {
    %c0_i32 = arith.constant 0 : i32
    %c0_i32_0 = arith.constant 0 : i32
    return %arg0, %c0_i32 : i32, i32
  }
  func.func @transform_6(%arg0: i32) -> (i32, i32) {
    %c0_i32 = arith.constant 0 : i32
    %c0_i32_0 = arith.constant 0 : i32
    return %c0_i32, %arg0 : i32, i32
  }
  func.func @transform_7(%arg0: i32) -> (i32, i32) {
    %c0_i32 = arith.constant 0 : i32
    %c0_i32_0 = arith.constant 0 : i32
    return %c0_i32, %arg0 : i32, i32
  }
}

</mosaic_0001>

<bundles_post_ra>
// kernel: tpu_custom_call.1
= control target key start
LH: loop header
LB: loop body
LE: loop exit
PB: predicated region body
PF: predicated region fallthrough
CT: control target
= control target key end

     0   :  { %13 = vsyncpa [#allocation3], 0  ;;  %s5752_s0 = inlined_call_operand.vmem [shape: f32[32,32], index: 0, kind: input, shape index: {}]   ;;  %s5753_s1 = inlined_call_operand.vmem [shape: f32[32,32], index: 1, kind: input, shape index: {}]   ;;  %s5754_s2 = inlined_call_operand.vmem [shape: f32[32,32], index: 2, kind: input, shape index: {}]   ;;  %s5755_s3 = inlined_call_operand.vmem [shape: f32[32,32], index: 3, kind: input, shape index: {}]   ;;  %s5756_s4 = inlined_call_operand.vmem [shape: f32[512,32], index: 4, kind: input, shape index: {}]   ;;  %s5757_s5 = inlined_call_operand.vmem [shape: f32[512,32], index: 5, kind: input, shape index: {}]   ;;  %s5758_s6 = inlined_call_operand.hbm [shape: f32[32,512], index: 6, kind: output, shape index: {0}]   ;;  %s5759_s7 = inlined_call_operand.hbm [shape: f32[32,512], index: 7, kind: output, shape index: {1}]  }
   0x1   :  { %15 = vsyncpa [#allocation3 + $0x1], 0 }
   0x2   :  { %16 = vsyncpa [#allocation5], 0 }
   0x3   :  { %18 = vsyncpa [#allocation5 + $0x1], 0  ;;  %s4323_s24 = smov 0   ;;  %s4325_s25 = smov 0  }
   0x4   :  { %s4327_s26 = smov 0   ;;  %s4329_s27 = smov 0  }
   0x5 LB: > { %s4344_s28 = sadd.s32 4294967295, %s4276_s27   ;;  %s3374_s29 = sadd.s32 4294967294, %s4276_s27   ;;  %s4276_s27 = sphi %s4329_s27, %s5860_s27   ;;  %s4272_s26 = sphi %s4327_s26, %s5859_s26   ;;  %s4268_s25 = sphi %s4325_s25, %s5858_s25   ;;  %s4264_s24 = sphi %s4323_s24, %s5857_s24  }
   0x6   : > { %s4348_s30 = sadd.s32 1, %s4276_s27   ;;  %s167_s8 = sadd.s32 1, %s4272_s26 }
   0x7   : > { %s164_s9 = ssub.s32 %s4276_s27, %s4348_s30  ;;  %p177_p0 = scmp.ne.s32.totalorder %s4272_s26, %s4268_s25 }
   0x8   : > { %p165_p1 = scmp.eq.s32.totalorder %s164_s9, 0  ;;  %p178_p2 = scmp.eq.s32.totalorder %s4344_s28, 1 }
   0x9   : > { %p183_p3 = scmp.ne.s32.totalorder %s4268_s25, %s4264_s24  ;;  %p184_p4 = scmp.eq.s32.totalorder %s3374_s29, 1 }
   0xa   : > { %s4359_s10 = scalar_select %p165_p1, %s4272_s26, %s167_s8  }
   0xb   : > { %p4361_p5 = por %p178_p2, %p177_p0  ;;  %p4365_p6 = por %p184_p4, %p183_p3 }
   0xc   : > { %p3377_p7 = scmp.ge.s32.totalorder %s4276_s27, 1  ;;  %p258_p8 = scmp.lt.s32.totalorder %s4276_s27, 3 }
   0xe   : > { %p259_p9 = pnand %p3377_p7, %p258_p8 }
  0x10   : > { %262 = sbr.rel (%p259_p9) target bundleno = 870 (0x366), region = 44 }
  0x15   : > { %v317_v0 = vld [vmem:[%s5752_s0 + $0x18] sm:$0xff]  ;;  %v4382_v2 = vld [vmem:[%s5752_s0 + $0x10] sm:$0xff]  ;;  %s3380_s19 = sshll.u32 %s4344_s28, 5  ;;  %v4395_v4 = vld [vmem:[%s5752_s0 + $0x8] sm:$0xff]  ;;  %vm394_vm0 = vcmask 261120   ;;  %s5623_s8 = sand.u32 1, %s4268_s25  }
  0x16   : > { %v4377_v1 = vld [vmem:[%s5753_s1 + $0x18] sm:$0xff]  ;;  %3802 = vmatprep.subr.mxu0 %v317_v0  ;;  %v4389_v3 = vld [vmem:[%s5753_s1 + $0x10] sm:$0xff]  ;;  %p301_p10 = scmp.lt.s32.totalorder %s3380_s19, 63  ;;  %v4400_v5 = vld [vmem:[%s5753_s1 + $0x8] sm:$0xff]  ;;  %s3378_s9 = sshll.u32 %s5623_s8, 6 }
  0x17   : > { %3858 = vmatprep.subr.mxu1 %v4377_v1  ;;  %3803 = vmatpush3.msra.mxu0 %v317_v0  ;;  %v4409_v6 = vld [vmem:[%s5752_s0] sm:$0xff]  ;;  %v325_v12 = vld [vmem:[%s5754_s2 + $0x18] sm:$0xff]  ;;  %v324_v15 = vld [vmem:[%s5754_s2 + $0x10] sm:$0xff]  ;;  %s5636_s13 = scalar_lea.vmem [#allocation2], %s3378_s9  ;;  %s5791_s15 = sshll.u32 %s4344_s28, 8 }
  0x18   : > { %3859 = vmatpush3.msra.mxu1 %v4377_v1  ;;  %3804 = vmatprep.subr.mxu0 %v4382_v2  ;;  %s5862_s19 = smov (!%p301_p10, %s3380_s19), 63  ;;  %v4414_v7 = vld [vmem:[%s5753_s1] sm:$0xff]  ;;  %v323_v20 = vld [vmem:[%s5754_s2 + $0x8] sm:$0xff]  ;;  %s3252_s14 = sshll.u32 %s5636_s13, 4  ;;  %s5663_s14 = int_to_ptr.vmem [resolvable:$true] %s3252_s14 }
  0x19   : > { %3860 = vmatprep.subr.mxu1 %v4389_v3  ;;  %3805 = vmatpush3.msra.mxu0 %v4382_v2  ;;  %s3381_s16 = sshll.u32 %s5862_s19, 3  ;;  %v322_v25 = vld [vmem:[%s5754_s2] sm:$0xff]  ;;  %s5671_s18 = scalar_lea.hbm %s5758_s6, %s5791_s15 }
  0x1a   : > { %3861 = vmatpush3.msra.mxu1 %v4389_v3  ;;  %3806 = vmatprep.subr.mxu0 %v4395_v4  ;;  %s4423_s20 = scalar_lea.vmem %s5756_s4, %s3381_s16  ;;  %s4428_s23 = scalar_lea.vmem %s5757_s5, %s3381_s16 }
  0x1b   : > { %3862 = vmatprep.subr.mxu1 %v4400_v5  ;;  %3807 = vmatpush3.msra.mxu0 %v4395_v4  ;;  %v4433_v8 = vld [vmem:[%s4423_s20] sm:$0xff]  ;;  %v4439_v10 = vld [vmem:[%s4423_s20 + $0x8] sm:$0xff]  ;;  %v4451_v13 = vld [vmem:[%s4423_s20 + $0x10] sm:$0xff]  ;;  %s4186_s21 = scalar_lea.vmem %s5663_s14, 1024  ;;  %s4278_s22 = smov [#allocation2]  }
  0x1c   : > { %3863 = vmatpush3.msra.mxu1 %v4400_v5  ;;  %3808 = vmatprep.subr.mxu0 %v4409_v6  ;;  %v4436_v9 = vld [vmem:[%s4428_s23] sm:$0xff]  ;;  %v4445_v11 = vld [vmem:[%s4428_s23 + $0x8] sm:$0xff]  ;;  %v4457_v14 = vld [vmem:[%s4428_s23 + $0x10] sm:$0xff]  ;;  %p4187_p11 = scmp.ne.s32.totalorder %s5663_s14, %s4186_s21 }
  0x1d   : > { %3864 = vmatprep.subr.mxu1 %v4414_v7  ;;  %3809 = vmatpush3.msra.mxu0 %v4409_v6  ;;  %v4469_v16 = vld [vmem:[%s4423_s20 + $0x18] sm:$0xff]  ;;  %v4477_v18 = vld [vmem:[%s4423_s20 + $0x20] sm:$0xff]  ;;  %v4494_v21 = vld [vmem:[%s4423_s20 + $0x28] sm:$0xff] }
  0x1e   : > { %3810 = vmatprep.mubr.msk.f32.mxu0 %vm394_vm0, %v4433_v8  ;;  %3865 = vmatpush3.msra.mxu1 %v4414_v7  ;;  %v4472_v17 = vld [vmem:[%s4428_s23 + $0x18] sm:$0xff]  ;;  %v4480_v19 = vld [vmem:[%s4428_s23 + $0x20] sm:$0xff]  ;;  %v4497_v22 = vld [vmem:[%s4428_s23 + $0x28] sm:$0xff]  ;;  %p4188_p12 = pnand %p4187_p11, %p4361_p5 }
  0x1f   : > { %3866 = vmatprep.mubr.msk.f32.mxu1 %vm394_vm0, %v4436_v9  ;;  %3811 = vmatmul.mubr.msk.f32.vlgmr.msra.gmra.mxu0 %vm394_vm0, %v4439_v10  ;;  %v4500_v23 = vld [vmem:[%s4423_s20 + $0x30] sm:$0xff]  ;;  %v4518_v26 = vld [vmem:[%s4423_s20 + $0x38] sm:$0xff]  ;;  %v4524_v28 = vld [vmem:[%s4423_s20 + $0x40] sm:$0xff] }
  0x20   : > { %3867 = vmatmul.mubr.msk.f32.vlgmr.msra.gmra.mxu1 %vm394_vm0, %v4445_v11  ;;  %3914 = vmatprep.subr.mxu0 %v325_v12  ;;  %v4503_v24 = vld [vmem:[%s4428_s23 + $0x30] sm:$0xff]  ;;  %v4521_v27 = vld [vmem:[%s4428_s23 + $0x38] sm:$0xff]  ;;  %v4527_v29 = vld [vmem:[%s4428_s23 + $0x40] sm:$0xff]  ;;  %p4189_p13 = pneg %p4188_p12 }
  0x21   : > { %3813 = vmatprep.mubr.msk.f32.mxu0 %vm394_vm0, %v4451_v13  ;;  %3915 = vmatpush3.msra.mxu0 %v325_v12  ;;  %v4540_v30 = vld [vmem:[%s4423_s20 + $0x48] sm:$0xff]  ;;  %v4546_v32 = vld [vmem:[%s4423_s20 + $0x50] sm:$0xff]  ;;  %v4563_v34 = vld [vmem:[%s4423_s20 + $0x58] sm:$0xff] }
  0x22   : > { %3869 = vmatprep.mubr.msk.f32.mxu1 %vm394_vm0, %v4457_v14  ;;  %3916 = vmatprep.subr.mxu0 %v324_v15  ;;  %v4543_v31 = vld [vmem:[%s4428_s23 + $0x48] sm:$0xff]  ;;  %v4549_v33 = vld [vmem:[%s4428_s23 + $0x50] sm:$0xff]  ;;  %v4566_v35 = vld [vmem:[%s4428_s23 + $0x58] sm:$0xff] }
  0x23   : > { %3970 = vmatprep.subr.mxu1 %v317_v0  ;;  %3814 = vmatmul.mubr.msk.f32.gmra.mxu0 %vm394_vm0, %v4469_v16  ;;  %v4569_v36 = vld [vmem:[%s4423_s20 + $0x60] sm:$0xff]  ;;  %v4584_v38 = vld [vmem:[%s4423_s20 + $0x68] sm:$0xff]  ;;  %v4590_v40 = vld [vmem:[%s4423_s20 + $0x70] sm:$0xff] }
  0x24   : > { %3870 = vmatmul.mubr.msk.f32.gmra.mxu1 %vm394_vm0, %v4472_v17  ;;  %3816 = vmatprep.mubr.msk.f32.mxu0 %vm394_vm0, %v4477_v18  ;;  %v4572_v37 = vld [vmem:[%s4428_s23 + $0x60] sm:$0xff]  ;;  %v4587_v39 = vld [vmem:[%s4428_s23 + $0x68] sm:$0xff]  ;;  %v4593_v41 = vld [vmem:[%s4428_s23 + $0x70] sm:$0xff] }
  0x25   : > { %3872 = vmatprep.mubr.msk.f32.mxu1 %vm394_vm0, %v4480_v19  ;;  %3917 = vmatpush3.msra.mxu0 %v324_v15  ;;  %v4604_v42 = vld [vmem:[%s4423_s20 + $0x78] sm:$0xff]  ;;  %v4610_v44 = vld [vmem:[%s4423_s20 + $0x80] sm:$0xff]  ;;  %v4624_v46 = vld [vmem:[%s4423_s20 + $0x88] sm:$0xff] }
  0x26   : > { %3971 = vmatpush3.msra.mxu1 %v317_v0  ;;  %3918 = vmatprep.subr.mxu0 %v323_v20  ;;  %v4607_v43 = vld [vmem:[%s4428_s23 + $0x78] sm:$0xff]  ;;  %v4613_v45 = vld [vmem:[%s4428_s23 + $0x80] sm:$0xff]  ;;  %v4627_v47 = vld [vmem:[%s4428_s23 + $0x88] sm:$0xff] }
  0x27   : > { %3972 = vmatprep.subr.mxu1 %v4382_v2  ;;  %3817 = vmatmul.mubr.msk.f32.gmra.mxu0 %vm394_vm0, %v4494_v21  ;;  %v4630_v48 = vld [vmem:[%s4423_s20 + $0x90] sm:$0xff]  ;;  %v4644_v50 = vld [vmem:[%s4423_s20 + $0x98] sm:$0xff]  ;;  %v4650_v52 = vld [vmem:[%s4423_s20 + $0xa0] sm:$0xff] }
  0x28   : > { %3873 = vmatmul.mubr.msk.f32.gmra.mxu1 %vm394_vm0, %v4497_v22  ;;  %3819 = vmatprep.mubr.msk.f32.mxu0 %vm394_vm0, %v4500_v23  ;;  %v4633_v49 = vld [vmem:[%s4428_s23 + $0x90] sm:$0xff]  ;;  %v4647_v51 = vld [vmem:[%s4428_s23 + $0x98] sm:$0xff]  ;;  %v4653_v53 = vld [vmem:[%s4428_s23 + $0xa0] sm:$0xff] }
  0x29   : > { %3875 = vmatprep.mubr.msk.f32.mxu1 %vm394_vm0, %v4503_v24  ;;  %3919 = vmatpush3.msra.mxu0 %v323_v20  ;;  %v4664_v54 = vld [vmem:[%s4423_s20 + $0xa8] sm:$0xff]  ;;  %v4670_v56 = vld [vmem:[%s4423_s20 + $0xb0] sm:$0xff]  ;;  %v4684_v58 = vld [vmem:[%s4423_s20 + $0xb8] sm:$0xff] }
  0x2a   : > { %3973 = vmatpush3.msra.mxu1 %v4382_v2  ;;  %3920 = vmatprep.subr.mxu0 %v322_v25  ;;  %v4667_v55 = vld [vmem:[%s4428_s23 + $0xa8] sm:$0xff]  ;;  %v4673_v57 = vld [vmem:[%s4428_s23 + $0xb0] sm:$0xff]  ;;  %v4687_v59 = vld [vmem:[%s4428_s23 + $0xb8] sm:$0xff] }
  0x2b   : > { %3974 = vmatprep.subr.mxu1 %v4395_v4  ;;  %3820 = vmatmul.mubr.msk.f32.gmra.mxu0 %vm394_vm0, %v4518_v26  ;;  %v4690_v60 = vld [vmem:[%s4423_s20 + $0xc0] sm:$0xff]  ;;  %v4704_v62 = vld [vmem:[%s4423_s20 + $0xc8] sm:$0xff]  ;;  %v4710_v0 = vld [vmem:[%s4423_s20 + $0xd0] sm:$0xff] }
  0x2c   : > { %3876 = vmatmul.mubr.msk.f32.gmra.mxu1 %vm394_vm0, %v4521_v27  ;;  %3822 = vmatprep.mubr.msk.f32.mxu0 %vm394_vm0, %v4524_v28  ;;  %v4693_v61 = vld [vmem:[%s4428_s23 + $0xc0] sm:$0xff]  ;;  %v4707_v63 = vld [vmem:[%s4428_s23 + $0xc8] sm:$0xff]  ;;  %5794 = vst [vmem:[#allocation8_spill] sm:$0xff] %v4710_v0  ;;  %v4713_v2 = vld [vmem:[%s4428_s23 + $0xd0] sm:$0xff] }
  0x2d   : > { %3878 = vmatprep.mubr.msk.f32.mxu1 %vm394_vm0, %v4527_v29  ;;  %3921 = vmatpush3.msra.mxu0 %v322_v25  ;;  %5795 = vst [vmem:[#allocation9_spill] sm:$0xff] %v4713_v2  ;;  %v4730_v12 = vld [vmem:[%s4423_s20 + $0xe0] sm:$0xff]  ;;  %v4744_v20 = vld [vmem:[%s4423_s20 + $0xe8] sm:$0xff] }
  0x2e   : > { %3975 = vmatpush3.msra.mxu1 %v4395_v4  ;;  %4026 = vmatprep.subr.mxu0 %v4377_v1  ;;  %v4724_v4 = vld [vmem:[%s4423_s20 + $0xd8] sm:$0xff]  ;;  %5798 = vst [vmem:[#allocation12_spill] sm:$0xff] %v4730_v12  ;;  %v4733_v15 = vld [vmem:[%s4428_s23 + $0xe0] sm:$0xff]  ;;  %v4747_v25 = vld [vmem:[%s4428_s23 + $0xe8] sm:$0xff] }
  0x2f   : > { %3976 = vmatprep.subr.mxu1 %v4409_v6  ;;  %3823 = vmatmul.mubr.msk.f32.gmra.mxu0 %vm394_vm0, %v4540_v30  ;;  %5796 = vst [vmem:[#allocation10_spill] sm:$0xff] %v4724_v4  ;;  %5799 = vst [vmem:[#allocation13_spill] sm:$0xff] %v4733_v15 }
  0x30   : > { %3879 = vmatmul.mubr.msk.f32.gmra.mxu1 %vm394_vm0, %v4543_v31  ;;  %3825 = vmatprep.mubr.msk.f32.mxu0 %vm394_vm0, %v4546_v32 }
  0x31   : > { %3881 = vmatprep.mubr.msk.f32.mxu1 %vm394_vm0, %v4549_v33  ;;  %3977 = vmatpush3.msra.mxu1 %v4409_v6  ;;  %v4727_v6 = vld [vmem:[%s4428_s23 + $0xd8] sm:$0xff] }
  0x32   : > { %5797 = vst [vmem:[#allocation11_spill] sm:$0xff] %v4727_v6 }
  0x33   : > { %3826 = vmatmul.mubr.msk.f32.gmra.mxu0 %vm394_vm0, %v4563_v34 }
  0x34   : > { %3882 = vmatmul.mubr.msk.f32.gmra.mxu1 %vm394_vm0, %v4566_v35  ;;  %3828 = vmatprep.mubr.msk.f32.mxu0 %vm394_vm0, %v4569_v36 }
  0x35   : > { %3884 = vmatprep.mubr.msk.f32.mxu1 %vm394_vm0, %v4572_v37 }
  0x37   : > { %3829 = vmatmul.mubr.msk.f32.gmra.mxu0 %vm394_vm0, %v4584_v38 }
  0x38   : > { %3885 = vmatmul.mubr.msk.f32.gmra.mxu1 %vm394_vm0, %v4587_v39  ;;  %3831 = vmatprep.mubr.msk.f32.mxu0 %vm394_vm0, %v4590_v40 }
  0x39   : > { %3887 = vmatprep.mubr.msk.f32.mxu1 %vm394_vm0, %v4593_v41 }
  0x3b   : > { %3832 = vmatmul.mubr.msk.f32.gmra.mxu0 %vm394_vm0, %v4604_v42 }
  0x3c   : > { %3888 = vmatmul.mubr.msk.f32.gmra.mxu1 %vm394_vm0, %v4607_v43  ;;  %3834 = vmatprep.mubr.msk.f32.mxu0 %vm394_vm0, %v4610_v44 }
  0x3d   : > { %3890 = vmatprep.mubr.msk.f32.mxu1 %vm394_vm0, %v4613_v45 }
  0x3f   : > { %3835 = vmatmul.mubr.msk.f32.gmra.mxu0 %vm394_vm0, %v4624_v46 }
  0x40   : > { %3891 = vmatmul.mubr.msk.f32.gmra.mxu1 %vm394_vm0, %v4627_v47  ;;  %3837 = vmatprep.mubr.msk.f32.mxu0 %vm394_vm0, %v4630_v48 }
  0x41   : > { %3893 = vmatprep.mubr.msk.f32.mxu1 %vm394_vm0, %v4633_v49 }
  0x43   : > { %3838 = vmatmul.mubr.msk.f32.gmra.mxu0 %vm394_vm0, %v4644_v50 }
  0x44   : > { %3894 = vmatmul.mubr.msk.f32.gmra.mxu1 %vm394_vm0, %v4647_v51  ;;  %3840 = vmatprep.mubr.msk.f32.mxu0 %vm394_vm0, %v4650_v52 }
  0x45   : > { %3896 = vmatprep.mubr.msk.f32.mxu1 %vm394_vm0, %v4653_v53 }
  0x47   : > { %3841 = vmatmul.mubr.msk.f32.gmra.mxu0 %vm394_vm0, %v4664_v54 }
  0x48   : > { %3897 = vmatmul.mubr.msk.f32.gmra.mxu1 %vm394_vm0, %v4667_v55  ;;  %3843 = vmatprep.mubr.msk.f32.mxu0 %vm394_vm0, %v4670_v56 }
  0x49   : > { %3899 = vmatprep.mubr.msk.f32.mxu1 %vm394_vm0, %v4673_v57 }
  0x4b   : > { %3844 = vmatmul.mubr.msk.f32.gmra.mxu0 %vm394_vm0, %v4684_v58 }
  0x4c   : > { %3900 = vmatmul.mubr.msk.f32.gmra.mxu1 %vm394_vm0, %v4687_v59  ;;  %3846 = vmatprep.mubr.msk.f32.mxu0 %vm394_vm0, %v4690_v60 }
  0x4d   : > { %3902 = vmatprep.mubr.msk.f32.mxu1 %vm394_vm0, %v4693_v61 }
  0x4f   : > { %3847 = vmatmul.mubr.msk.f32.gmra.mxu0 %vm394_vm0, %v4704_v62 }
  0x50   : > { %3903 = vmatmul.mubr.msk.f32.gmra.mxu1 %vm394_vm0, %v4707_v63  ;;  %3849 = vmatprep.mubr.msk.f32.mxu0 %vm394_vm0, %v4710_v0  ;;  %v4753_v0 = vld [vmem:[%s4428_s23 + $0xf0] sm:$0xff] }
  0x51   : > { %3905 = vmatprep.mubr.msk.f32.mxu1 %vm394_vm0, %v4713_v2  ;;  %v4750_v2 = vld [vmem:[%s4423_s20 + $0xf0] sm:$0xff]  ;;  %5800 = vst [vmem:[#allocation14_spill] sm:$0xff] %v4753_v0 }
  0x53   : > { %3850 = vmatmul.mubr.msk.f32.gmra.mxu0 %vm394_vm0, %v4724_v4  ;;  %v1038_v4 = vadd.f32 %v4445_v11, %v4439_v10  ;;  %v1042_v10 = vadd.f32 %v4497_v22, %v4494_v21  ;;  %v1043_v11 = vadd.f32 %v4503_v24, %v4500_v23  ;;  %v1054_v21 = vadd.f32 %v4627_v47, %v4624_v46 }
  0x54   : > { %3906 = vmatmul.mubr.msk.f32.gmra.mxu1 %vm394_vm0, %v4727_v6  ;;  %3852 = vmatprep.mubr.msk.f32.mxu0 %vm394_vm0, %v4730_v12  ;;  %v1037_v12 = vadd.f32 %v4436_v9, %v4433_v8  ;;  %v4769_v6 = vld [vmem:[%s4428_s23 + $0xf8] sm:$0xff]  ;;  %v1039_v8 = vadd.f32 %v4457_v14, %v4451_v13  ;;  %v1040_v9 = vadd.f32 %v4472_v17, %v4469_v16  ;;  %s4190_s23 = sshll.u32 %s4278_s22, 4  ;;  %s4191_s23 = int_to_ptr.vmem [resolvable:$false] %s4190_s23 }
  0x55   : > { %3908 = vmatprep.mubr.msk.f32.mxu1 %vm394_vm0, %v4733_v15  ;;  %v4766_v15 = vld [vmem:[%s4423_s20 + $0xf8] sm:$0xff]  ;;  %v1046_v13 = vadd.f32 %v4543_v31, %v4540_v30  ;;  %v1049_v14 = vadd.f32 %v4572_v37, %v4569_v36  ;;  %v1050_v16 = vadd.f32 %v4587_v39, %v4584_v38  ;;  %v1051_v17 = vadd.f32 %v4593_v41, %v4590_v40  ;;  %v5801_v31 = vld [vmem:[#allocation8_spill] sm:$0xff]  ;;  %v5806_v38 = vld [vmem:[#allocation13_spill] sm:$0xff]  ;;  %s3234_s20 = scalar_lea.sflag [#allocation3], %s5623_s8  ;;  %s4192_s19 = scalar_lea.vmem %s4191_s23, 2048 }
  0x56   : > { %v1055_v22 = vadd.f32 %v4633_v49, %v4630_v48  ;;  %v1056_v23 = vadd.f32 %v4647_v51, %v4644_v50  ;;  %v1057_v24 = vadd.f32 %v4653_v53, %v4650_v52  ;;  %v1062_v30 = vadd.f32 %v4707_v63, %v4704_v62  ;;  %v5805_v37 = vld [vmem:[#allocation12_spill] sm:$0xff]  ;;  %p4193_p0 = scmp.lt.s32.totalorder %s5663_s14, %s4191_s23  ;;  %p4194_p1 = scmp.lt.s32.totalorder %s4192_s19, %s4186_s21 }
  0x57   : > { %3853 = vmatmul.mubr.msk.f32.gmra.mxu0 %vm394_vm0, %v4744_v20  ;;  %v1065_v39 = vadd.f32 %v5806_v38, %v5805_v37  ;;  %v1066_v40 = vadd.f32 %v4747_v25, %v4744_v20 }
  0x58   : > { %3909 = vmatmul.mubr.msk.f32.gmra.mxu1 %vm394_vm0, %v4747_v25  ;;  %3855 = vmatprep.mubr.msk.f32.mxu0 %vm394_vm0, %v4750_v2  ;;  %v5807_v41 = vld [vmem:[#allocation14_spill] sm:$0xff]  ;;  %p4195_p2 = por %p4194_p1, %p4193_p0 }
  0x59   : > { %3911 = vmatprep.mubr.msk.f32.mxu1 %vm394_vm0, %v4753_v0  ;;  %v1041_v0 = vadd.f32 %v4480_v19, %v4477_v18  ;;  %v1052_v18 = vadd.f32 %v4607_v43, %v4604_v42  ;;  %v1053_v19 = vadd.f32 %v4613_v45, %v4610_v44  ;;  %v1067_v42 = vadd.f32 %v5807_v41, %v4750_v2 }
  0x5a   : > { %v1068_v43 = vadd.f32 %v4769_v6, %v4766_v15  ;;  %p4196_p3 = pnand %p4195_p2, %p4189_p13 }
  0x5b   : > { %3856 = vmatmul.mubr.msk.f32.gmra.mxu0 %vm394_vm0, %v4766_v15 }
  0x5c   : > { %3912 = vmatmul.mubr.msk.f32.gmra.mxu1 %vm394_vm0, %v4769_v6  ;;  %3922 = vmatprep.mubr.msk.f32.mxu0 %vm394_vm0, %v1037_v12 }
  0x5f   : > { %3923 = vmatmul.mubr.msk.f32.vlgmr.msra.gmra.mxu0 %vm394_vm0, %v1038_v4 }
  0x60   : > { %3925 = vmatprep.mubr.msk.f32.mxu0 %vm394_vm0, %v1039_v8  ;;  %4027 = vmatpush3.msra.mxu0 %v4377_v1  ;;  %v1044_v1 = vadd.f32 %v4521_v27, %v4518_v26  ;;  %v1058_v26 = vadd.f32 %v4667_v55, %v4664_v54  ;;  %v1059_v27 = vadd.f32 %v4673_v57, %v4670_v56 }
  0x61   : > { %4028 = vmatprep.subr.mxu0 %v4389_v3 }
  0x62   : > { %4029 = vmatpush3.msra.mxu0 %v4389_v3  ;;  %v1045_v3 = vadd.f32 %v4527_v29, %v4524_v28  ;;  %v1060_v28 = vadd.f32 %v4687_v59, %v4684_v58  ;;  %v1061_v29 = vadd.f32 %v4693_v61, %v4690_v60 }
  0x63   : > { %3926 = vmatmul.mubr.msk.f32.gmra.mxu0 %vm394_vm0, %v1040_v9  ;;  %4030 = vmatprep.subr.mxu0 %v4400_v5 }
  0x64   : > { %3928 = vmatprep.mubr.msk.f32.mxu0 %vm394_vm0, %v1041_v0  ;;  %4031 = vmatpush3.msra.mxu0 %v4400_v5  ;;  %v1047_v5 = vadd.f32 %v4549_v33, %v4546_v32  ;;  %v5802_v32 = vld [vmem:[#allocation9_spill] sm:$0xff] }
  0x65   : > { %4032 = vmatprep.subr.mxu0 %v4414_v7  ;;  %v1063_v33 = vadd.f32 %v5802_v32, %v5801_v31 }
  0x66   : > { %4033 = vmatpush3.msra.mxu0 %v4414_v7  ;;  %v1048_v7 = vadd.f32 %v4566_v35, %v4563_v34  ;;  %v5803_v34 = vld [vmem:[#allocation10_spill] sm:$0xff]  ;;  %v5804_v35 = vld [vmem:[#allocation11_spill] sm:$0xff] }
  0x67   : > { %3929 = vmatmul.mubr.msk.f32.gmra.mxu0 %vm394_vm0, %v1042_v10  ;;  %v1064_v36 = vadd.f32 %v5804_v35, %v5803_v34 }
  0x68   : > { %3931 = vmatprep.mubr.msk.f32.mxu0 %vm394_vm0, %v1043_v11 }
  0x6b   : > { %3932 = vmatmul.mubr.msk.f32.gmra.mxu0 %vm394_vm0, %v1044_v1 }
  0x6c   : > { %3934 = vmatprep.mubr.msk.f32.mxu0 %vm394_vm0, %v1045_v3 }
  0x6f   : > { %3935 = vmatmul.mubr.msk.f32.gmra.mxu0 %vm394_vm0, %v1046_v13 }
  0x70   : > { %3937 = vmatprep.mubr.msk.f32.mxu0 %vm394_vm0, %v1047_v5 }
  0x73   : > { %3938 = vmatmul.mubr.msk.f32.gmra.mxu0 %vm394_vm0, %v1048_v7 }
  0x74   : > { %3940 = vmatprep.mubr.msk.f32.mxu0 %vm394_vm0, %v1049_v14 }
  0x77   : > { %3941 = vmatmul.mubr.msk.f32.gmra.mxu0 %vm394_vm0, %v1050_v16 }
  0x78   : > { %3943 = vmatprep.mubr.msk.f32.mxu0 %vm394_vm0, %v1051_v17 }
  0x7b   : > { %3944 = vmatmul.mubr.msk.f32.gmra.mxu0 %vm394_vm0, %v1052_v18 }
  0x7c   : > { %3946 = vmatprep.mubr.msk.f32.mxu0 %vm394_vm0, %v1053_v19 }
  0x7f   : > { %3947 = vmatmul.mubr.msk.f32.gmra.mxu0 %vm394_vm0, %v1054_v21 }
  0x80   : > { %3949 = vmatprep.mubr.msk.f32.mxu0 %vm394_vm0, %v1055_v22 }
  0x83   : > { %3950 = vmatmul.mubr.msk.f32.gmra.mxu0 %vm394_vm0, %v1056_v23 }
  0x84   : > { %3952 = vmatprep.mubr.msk.f32.mxu0 %vm394_vm0, %v1057_v24 }
  0x87   : > { %3953 = vmatmul.mubr.msk.f32.gmra.mxu0 %vm394_vm0, %v1058_v26 }
  0x88   : > { %3955 = vmatprep.mubr.msk.f32.mxu0 %vm394_vm0, %v1059_v27 }
  0x8b   : > { %3956 = vmatmul.mubr.msk.f32.gmra.mxu0 %vm394_vm0, %v1060_v28 }
  0x8c   : > { %3958 = vmatprep.mubr.msk.f32.mxu0 %vm394_vm0, %v1061_v29 }
  0x8f   : > { %3959 = vmatmul.mubr.msk.f32.gmra.mxu0 %vm394_vm0, %v1062_v30 }
  0x90   : > { %3961 = vmatprep.mubr.msk.f32.mxu0 %vm394_vm0, %v1063_v33 }
  0x93   : > { %3962 = vmatmul.mubr.msk.f32.gmra.mxu0 %vm394_vm0, %v1064_v36 }
  0x94   : > { %3964 = vmatprep.mubr.msk.f32.mxu0 %vm394_vm0, %v1065_v39 }
  0x97   : > { %3965 = vmatmul.mubr.msk.f32.gmra.mxu0 %vm394_vm0, %v1066_v40 }
  0x98   : > { %3967 = vmatprep.mubr.msk.f32.mxu0 %vm394_vm0, %v1067_v42 }
  0x9b   : > { %3968 = vmatmul.mubr.msk.f32.gmra.mxu0 %vm394_vm0, %v1068_v43 }
  0xdf   : > { %v4876_v44 = vpop.f32.mrf.mxu0 }
  0xe0   : > { %v4878_v45 = vpop.f32.mrf.mxu1 }
  0xe1   : > { %v4880_v46 = vpop.f32.mrf.mxu0  ;;  %v1391_v53 = vadd.f32 %v4878_v45, %v4876_v44 }
  0xe2   : > { %v4882_v47 = vpop.f32.mrf.mxu1 }
  0xe3   : > { %v1390_v48 = vadd.f32 %v4882_v47, %v4880_v46  ;;  %v4886_v49 = vpop.f32.mrf.mxu0 }
  0xe4   : > { %v4888_v50 = vpop.f32.mrf.mxu1 }
  0xe5   : > { %1486 = vxpose.xlu0.b32.start [1/4] (short) (narrow) %v1390_v48, 32  ;;  %v4890_v51 = vpop.f32.mrf.mxu0  ;;  %v1393_v0 = vadd.f32 %v4888_v50, %v4886_v49 }
  0xe6   : > { %v4892_v52 = vpop.f32.mrf.mxu1 }
  0xe7   : > { %v4896_v54 = vpop.f32.mrf.mxu0  ;;  %v1392_v58 = vadd.f32 %v4892_v52, %v4890_v51 }
  0xe8   : > { %v4898_v55 = vpop.f32.mrf.mxu1 }
  0xe9   : > { %1487 = vxpose.xlu0.b32.cont [2/4] (short) (narrow) %v1391_v53, 32  ;;  %v4900_v56 = vpop.f32.mrf.mxu0  ;;  %v1395_v2 = vadd.f32 %v4898_v55, %v4896_v54 }
  0xea   : > { %v4902_v57 = vpop.f32.mrf.mxu1 }
  0xeb   : > { %v1394_v59 = vadd.f32 %v4902_v57, %v4900_v56  ;;  %v4908_v60 = vpop.f32.mrf.mxu0 }
  0xec   : > { %v4910_v61 = vpop.f32.mrf.mxu1 }
  0xed   : > { %1488 = vxpose.xlu0.b32.cont [3/4] (short) (narrow) %v1392_v58, 32  ;;  %1518 = vxpose.xlu1.b32.start [1/4] (short) (narrow) %v1394_v59, 32  ;;  %v4912_v62 = vpop.f32.mrf.mxu0  ;;  %v1397_v3 = vadd.f32 %v4910_v61, %v4908_v60 }
  0xee   : > { %v4914_v63 = vpop.f32.mrf.mxu1 }
  0xef   : > { %v4920_v4 = vpop.f32.mrf.mxu0  ;;  %v1396_v20 = vadd.f32 %v4914_v63, %v4912_v62 }
  0xf0   : > { %v4922_v6 = vpop.f32.mrf.mxu1 }
  0xf1   : > { %1489 = vxpose.xlu0.b32.end [4/4] (short) (narrow) %v1393_v0, 32  ;;  %1519 = vxpose.xlu1.b32.cont [2/4] (short) (narrow) %v1395_v2, 32  ;;  %v4924_v12 = vpop.f32.mrf.mxu0  ;;  %v1399_v1 = vadd.f32 %v4922_v6, %v4920_v4 }
  0xf2   : > { %v4926_v15 = vpop.f32.mrf.mxu1 }
  0xf3   : > { %v1398_v25 = vadd.f32 %v4926_v15, %v4924_v12  ;;  %v4932_v8 = vpop.f32.mrf.mxu0 }
  0xf4   : > { %v4934_v9 = vpop.f32.mrf.mxu1 }
  0xf5   : > { %1520 = vxpose.xlu1.b32.cont [3/4] (short) (narrow) %v1396_v20, 32  ;;  %1550 = vxpose.xlu0.b32.start [1/4] (short) (narrow) %v1398_v25, 32  ;;  %v4936_v10 = vpop.f32.mrf.mxu0  ;;  %v1401_v23 = vadd.f32 %v4934_v9, %v4932_v8 }
  0xf6   : > { %v4938_v11 = vpop.f32.mrf.mxu1 }
  0xf7   : > { %v4944_v13 = vpop.f32.mrf.mxu0  ;;  %v1400_v16 = vadd.f32 %v4938_v11, %v4936_v10 }
  0xf8   : > { %v4946_v5 = vpop.f32.mrf.mxu1 }
  0xf9   : > { %1521 = vxpose.xlu1.b32.end [4/4] (short) (narrow) %v1397_v3, 32  ;;  %1551 = vxpose.xlu0.b32.cont [2/4] (short) (narrow) %v1399_v1, 32  ;;  %v4948_v7 = vpop.f32.mrf.mxu0  ;;  %v1403_v24 = vadd.f32 %v4946_v5, %v4944_v13 }
  0xfa   : > { %v4950_v14 = vpop.f32.mrf.mxu1 }
  0xfb   : > { %v1402_v17 = vadd.f32 %v4950_v14, %v4948_v7  ;;  %v4956_v18 = vpop.f32.mrf.mxu0 }
  0xfc   : > { %v4958_v19 = vpop.f32.mrf.mxu1 }
  0xfd   : > { %1552 = vxpose.xlu0.b32.cont [3/4] (short) (narrow) %v1400_v16, 32  ;;  %1582 = vxpose.xlu1.b32.start [1/4] (short) (narrow) %v1402_v17, 32  ;;  %v4960_v21 = vpop.f32.mrf.mxu0  ;;  %v1405_v36 = vadd.f32 %v4958_v19, %v4956_v18 }
  0xfe   : > { %v4962_v22 = vpop.f32.mrf.mxu1 }
  0xff   : > { %v4968_v26 = vpop.f32.mrf.mxu0  ;;  %v1404_v30 = vadd.f32 %v4962_v22, %v4960_v21 }
 0x100   : > { %v4970_v27 = vpop.f32.mrf.mxu1 }
 0x101   : > { %1553 = vxpose.xlu0.b32.end [4/4] (short) (narrow) %v1401_v23, 32  ;;  %1583 = vxpose.xlu1.b32.cont [2/4] (short) (narrow) %v1403_v24, 32  ;;  %v4972_v28 = vpop.f32.mrf.mxu0  ;;  %v1407_v37 = vadd.f32 %v4970_v27, %v4968_v26 }
 0x102   : > { %v4974_v29 = vpop.f32.mrf.mxu1 }
 0x103   : > { %v1406_v31 = vadd.f32 %v4974_v29, %v4972_v28  ;;  %v4980_v32 = vpop.f32.mrf.mxu0 }
 0x104   : > { %v4982_v33 = vpop.f32.mrf.mxu1 }
 0x105   : > { %1584 = vxpose.xlu1.b32.cont [3/4] (short) (narrow) %v1404_v30, 32  ;;  %1614 = vxpose.xlu0.b32.start [1/4] (short) (narrow) %v1406_v31, 32  ;;  %v4984_v34 = vpop.f32.mrf.mxu0  ;;  %v1409_v0 = vadd.f32 %v4982_v33, %v4980_v32 }
 0x106   : > { %v4986_v35 = vpop.f32.mrf.mxu1 }
 0x107   : > { %v4992_v38 = vpop.f32.mrf.mxu0  ;;  %v1408_v42 = vadd.f32 %v4986_v35, %v4984_v34 }
 0x108   : > { %v4994_v39 = vpop.f32.mrf.mxu1 }
 0x109   : > { %1585 = vxpose.xlu1.b32.end [4/4] (short) (narrow) %v1405_v36, 32  ;;  %1615 = vxpose.xlu0.b32.cont [2/4] (short) (narrow) %v1407_v37, 32  ;;  %v4996_v40 = vpop.f32.mrf.mxu0  ;;  %v1411_v2 = vadd.f32 %v4994_v39, %v4992_v38 }
 0x10a   : > { %v4998_v41 = vpop.f32.mrf.mxu1 }
 0x10b   : > { %v1410_v43 = vadd.f32 %v4998_v41, %v4996_v40  ;;  %v5004_v48 = vpop.f32.mrf.mxu0 }
 0x10c   : > { %v5006_v53 = vpop.f32.mrf.mxu1 }
 0x10d   : > { %5808 = vst [vmem:[#allocation8_spill] sm:$0xff] %v5006_v53  ;;  %1616 = vxpose.xlu0.b32.cont [3/4] (short) (narrow) %v1408_v42, 32  ;;  %1646 = vxpose.xlu1.b32.start [1/4] (short) (narrow) %v1410_v43, 32  ;;  %v5008_v58 = vpop.f32.mrf.mxu0  ;;  %v1413_v36 = vadd.f32 %v5006_v53, %v5004_v48 }
 0x10e   : > { %v5010_v59 = vpop.f32.mrf.mxu1 }
 0x10f   : > { %v5016_v20 = vpop.f32.mrf.mxu0  ;;  %v1412_v16 = vadd.f32 %v5010_v59, %v5008_v58 }
 0x110   : > { %5809 = vst [vmem:[#allocation9_spill] sm:$0xff] %v5016_v20  ;;  %v5018_v25 = vpop.f32.mrf.mxu1 }
 0x111   : > { %5810 = vst [vmem:[#allocation10_spill] sm:$0xff] %v5018_v25  ;;  %1617 = vxpose.xlu0.b32.end [4/4] (short) (narrow) %v1409_v0, 32  ;;  %1647 = vxpose.xlu1.b32.cont [2/4] (short) (narrow) %v1411_v2, 32  ;;  %v5020_v1 = vpop.f32.mrf.mxu0  ;;  %v1415_v37 = vadd.f32 %v5018_v25, %v5016_v20 }
 0x112   : > { %v5022_v3 = vpop.f32.mrf.mxu1 }
 0x113   : > { %5811 = vst [vmem:[#allocation11_spill] sm:$0xff] %v5022_v3  ;;  %v1414_v17 = vadd.f32 %v5022_v3, %v5020_v1  ;;  %v5028_v23 = vpop.f32.mrf.mxu0 }
 0x114   : > { %5812 = vst [vmem:[#allocation12_spill] sm:$0xff] %v5028_v23  ;;  %v5030_v24 = vpop.f32.mrf.mxu1 }
 0x115   : > { %5813 = vst [vmem:[#allocation13_spill] sm:$0xff] %v5030_v24  ;;  %1648 = vxpose.xlu1.b32.cont [3/4] (short) (narrow) %v1412_v16, 32  ;;  %1678 = vxpose.xlu0.b32.start [1/4] (short) (narrow) %v1414_v17, 32  ;;  %v5032_v30 = vpop.f32.mrf.mxu0 }
 0x116   : > { %5814 = vst [vmem:[#allocation14_spill] sm:$0xff] %v5032_v30  ;;  %v5034_v31 = vpop.f32.mrf.mxu1 }
 0x117   : > { %5815 = vst [vmem:[#allocation15_spill] sm:$0xff] %v5034_v31  ;;  %v5040_v42 = vpop.f32.mrf.mxu0  ;;  %v1416_v16 = vadd.f32 %v5034_v31, %v5032_v30 }
 0x118   : > { %5816 = vst [vmem:[#allocation16_spill] sm:$0xff] %v5040_v42  ;;  %v5042_v43 = vpop.f32.mrf.mxu1 }
 0x119   : > { %5817 = vst [vmem:[#allocation17_spill] sm:$0xff] %v5042_v43  ;;  %1649 = vxpose.xlu1.b32.end [4/4] (short) (narrow) %v1413_v36, 32  ;;  %1679 = vxpose.xlu0.b32.cont [2/4] (short) (narrow) %v1415_v37, 32  ;;  %v5044_v0 = vpop.f32.mrf.mxu0  ;;  %v1417_v36 = vadd.f32 %v5030_v24, %v5028_v23  ;;  %v1419_v37 = vadd.f32 %v5042_v43, %v5040_v42 }
 0x11a   : > { %5818 = vst [vmem:[#allocation18_spill] sm:$0xff] %v5044_v0  ;;  %v5046_v2 = vpop.f32.mrf.mxu1 }
 0x11b   : > { %5819 = vst [vmem:[#allocation19_spill] sm:$0xff] %v5046_v2  ;;  %v1418_v17 = vadd.f32 %v5046_v2, %v5044_v0  ;;  %v5052_v53 = vpop.f32.mrf.mxu0  ;;  %v5067_v2 = vld [vmem:[%s5755_s3 + $0x18] sm:$0xff] }
 0x11c   : > { %v5054_v3 = vpop.f32.mrf.mxu1  ;;  %5821 = vst [vmem:[#allocation21_spill] sm:$0xff] %v5067_v2  ;;  %4082 = vmatprep.subr.mxu1 %v5067_v2 }
 0x11d   : > { %1680 = vxpose.xlu0.b32.cont [3/4] (short) (narrow) %v1416_v16, 32  ;;  %1710 = vxpose.xlu1.b32.start [1/4] (short) (narrow) %v1418_v17, 32  ;;  %v5056_v25 = vpop.f32.mrf.mxu0  ;;  %v1421_v42 = vadd.f32 %v5054_v3, %v5052_v53 }
 0x11e   : > { %v5062_v20 = vpop.f32.mrf.mxu1 }
 0x11f   : > { %5820 = vst [vmem:[#allocation20_spill] sm:$0xff] %v5062_v20  ;;  %v3924_v31 = vpop.f32.mrf.mxu0  ;;  %v1420_v17 = vadd.f32 %v5062_v20, %v5056_v25 }
 0x120   : > { %v1423_v43 = vsub.f32 %v3924_v31, %v4876_v44 }
 0x121   : > { %1681 = vxpose.xlu0.b32.end [4/4] (short) (narrow) %v1417_v36, 32  ;;  %1711 = vxpose.xlu1.b32.cont [2/4] (short) (narrow) %v1419_v37, 32  ;;  %v1231_v16 = vpop.f32.mrf.mxu0 }
 0x122   : > { %v1422_v24 = vsub.f32 %v1231_v16, %v4880_v46  ;;  %v1455_v30 = vadd.f32 %v4878_v45, %v1423_v43 }
 0x123   : > { %v3927_v23 = vpop.f32.mrf.mxu0 }
 0x124   : > { %v1454_v36 = vadd.f32 %v1422_v24, %v4882_v47  ;;  %v1425_v44 = vsub.f32 %v3927_v23, %v4886_v49 }
 0x125   : > { %1712 = vxpose.xlu1.b32.cont [3/4] (short) (narrow) %v1420_v17, 32  ;;  %v1241_v37 = vpop.f32.mrf.mxu0 }
 0x126   : > { %1742 = vxpose.xlu0.b32.start [1/4] (short) (narrow) %v1454_v36, 32  ;;  %v1424_v2 = vsub.f32 %v1241_v37, %v4890_v51  ;;  %v1457_v51 = vadd.f32 %v4888_v50, %v1425_v44 }
 0x127   : > { %v3930_v0 = vpop.f32.mrf.mxu0 }
 0x128   : > { %v1456_v47 = vadd.f32 %v1424_v2, %v4892_v52  ;;  %v1427_v24 = vsub.f32 %v3930_v0, %v4896_v54 }
 0x129   : > { %1713 = vxpose.xlu1.b32.end [4/4] (short) (narrow) %v1421_v42, 32  ;;  %v1251_v20 = vpop.f32.mrf.mxu0 }
 0x12a   : > { %v1426_v46 = vsub.f32 %v1251_v20, %v4900_v56  ;;  %1743 = vxpose.xlu0.b32.cont [2/4] (short) (narrow) %v1455_v30, 32  ;;  %v1459_v42 = vadd.f32 %v4898_v55, %v1427_v24 }
 0x12b   : > { %v3933_v16 = vpop.f32.mrf.mxu0 }
 0x12c   : > { %v1458_v31 = vadd.f32 %v1426_v46, %v4902_v57  ;;  %v1429_v52 = vsub.f32 %v3933_v16, %v4908_v60 }
 0x12d   : > { %v1261_v17 = vpop.f32.mrf.mxu0 }
 0x12e   : > { %1744 = vxpose.xlu0.b32.cont [3/4] (short) (narrow) %v1456_v47, 32  ;;  %1774 = vxpose.xlu1.b32.start [1/4] (short) (narrow) %v1458_v31, 32  ;;  %v1428_v56 = vsub.f32 %v1261_v17, %v4912_v62  ;;  %v1461_v55 = vadd.f32 %v4910_v61, %v1429_v52  ;;  %v5825_v52 = vld [vmem:[#allocation10_spill] sm:$0xff] }
 0x12f   : > { %v3936_v45 = vpop.f32.mrf.mxu0 }
 0x130   : > { %v1460_v54 = vadd.f32 %v1428_v56, %v4914_v63  ;;  %v1431_v57 = vsub.f32 %v3936_v45, %v4920_v4 }
 0x131   : > { %v1271_v20 = vpop.f32.mrf.mxu0 }
 0x132   : > { %v1430_v30 = vsub.f32 %v1271_v20, %v4924_v12  ;;  %1745 = vxpose.xlu0.b32.end [4/4] (short) (narrow) %v1457_v51, 32  ;;  %1775 = vxpose.xlu1.b32.cont [2/4] (short) (narrow) %v1459_v42, 32  ;;  %v1463_v62 = vadd.f32 %v4922_v6, %v1431_v57  ;;  %v5823_v20 = vld [vmem:[#allocation11_spill] sm:$0xff] }
 0x133   : > { %v3939_v49 = vpop.f32.mrf.mxu0 }
 0x134   : > { %v1462_v23 = vadd.f32 %v1430_v30, %v4926_v15  ;;  %v1433_v63 = vsub.f32 %v3939_v49, %v4932_v8 }
 0x135   : > { %v1281_v43 = vpop.f32.mrf.mxu0 }
 0x136   : > { %1776 = vxpose.xlu1.b32.cont [3/4] (short) (narrow) %v1460_v54, 32  ;;  %1806 = vxpose.xlu0.b32.start [1/4] (short) (narrow) %v1462_v23, 32  ;;  %v1432_v12 = vsub.f32 %v1281_v43, %v4936_v10  ;;  %v1465_v6 = vadd.f32 %v4934_v9, %v1433_v63  ;;  %v5827_v43 = vld [vmem:[#allocation18_spill] sm:$0xff] }
 0x137   : > { %v3942_v50 = vpop.f32.mrf.mxu0 }
 0x138   : > { %v1464_v4 = vadd.f32 %v1432_v12, %v4938_v11  ;;  %v1435_v15 = vsub.f32 %v3942_v50, %v4944_v13 }
 0x139   : > { %v1291_v0 = vpop.f32.mrf.mxu0 }
 0x13a   : > { %v1434_v2 = vsub.f32 %v1291_v0, %v4948_v7  ;;  %1777 = vxpose.xlu1.b32.end [4/4] (short) (narrow) %v1461_v55, 32  ;;  %1807 = vxpose.xlu0.b32.cont [2/4] (short) (narrow) %v1463_v62, 32  ;;  %v1467_v10 = vadd.f32 %v4946_v5, %v1435_v15  ;;  %v5829_v62 = vld [vmem:[#allocation15_spill] sm:$0xff]  ;;  %v5830_v0 = vld [vmem:[#allocation16_spill] sm:$0xff]  ;;  %v5832_v15 = vld [vmem:[#allocation13_spill] sm:$0xff] }
 0x13b   : > { %v3945_v60 = vpop.f32.mrf.mxu0 }
 0x13c   : > { %v1466_v36 = vadd.f32 %v1434_v2, %v4950_v14  ;;  %v1437_v11 = vsub.f32 %v3945_v60, %v4956_v18  ;;  %v5831_v60 = vld [vmem:[#allocation19_spill] sm:$0xff] }
 0x13d   : > { %v1301_v37 = vpop.f32.mrf.mxu0 }
 0x13e   : > { %1808 = vxpose.xlu0.b32.cont [3/4] (short) (narrow) %v1464_v4, 32  ;;  %1838 = vxpose.xlu1.b32.start [1/4] (short) (narrow) %v1466_v36, 32  ;;  %v1436_v7 = vsub.f32 %v1301_v37, %v4960_v21  ;;  %v1469_v5 = vadd.f32 %v4958_v19, %v1437_v11  ;;  %v5833_v37 = vld [vmem:[#allocation17_spill] sm:$0xff]  ;;  %v328_v11 = vld [vmem:[%s5755_s3 + $0x10] sm:$0xff] }
 0x13f   : > { %v3948_v61 = vpop.f32.mrf.mxu0 }
 0x140   : > { %v1468_v13 = vadd.f32 %v1436_v7, %v4962_v22  ;;  %v1439_v14 = vsub.f32 %v3948_v61, %v4968_v26 }
 0x141   : > { %v1311_v46 = vpop.f32.mrf.mxu0 }
 0x142   : > { %v1438_v16 = vsub.f32 %v1311_v46, %v4972_v28  ;;  %1809 = vxpose.xlu0.b32.end [4/4] (short) (narrow) %v1465_v6, 32  ;;  %1839 = vxpose.xlu1.b32.cont [2/4] (short) (narrow) %v1467_v10, 32  ;;  %v1471_v21 = vadd.f32 %v4970_v27, %v1439_v14  ;;  %v5834_v46 = vld [vmem:[#allocation20_spill] sm:$0xff] }
 0x143   : > { %v3951_v8 = vpop.f32.mrf.mxu0 }
 0x144   : > { %v1470_v44 = vadd.f32 %v1438_v16, %v4974_v29  ;;  %v1441_v22 = vsub.f32 %v3951_v8, %v4980_v32 }
 0x145   : > { %v1321_v47 = vpop.f32.mrf.mxu0 }
 0x146   : > { %1840 = vxpose.xlu1.b32.cont [3/4] (short) (narrow) %v1468_v13, 32  ;;  %1870 = vxpose.xlu0.b32.start [1/4] (short) (narrow) %v1470_v44, 32  ;;  %v1440_v28 = vsub.f32 %v1321_v47, %v4984_v34  ;;  %v1473_v27 = vadd.f32 %v4982_v33, %v1441_v22  ;;  %v327_v13 = vld [vmem:[%s5755_s3 + $0x8] sm:$0xff]  ;;  %v326_v47 = vld [vmem:[%s5755_s3] sm:$0xff] }
 0x147   : > { %v3954_v9 = vpop.f32.mrf.mxu0 }
 0x148   : > { %v1472_v26 = vadd.f32 %v1440_v28, %v4986_v35  ;;  %v1443_v29 = vsub.f32 %v3954_v9, %v4992_v38 }
 0x149   : > { %v1331_v24 = vpop.f32.mrf.mxu0 }
 0x14a   : > { %v1442_v31 = vsub.f32 %v1331_v24, %v4996_v40  ;;  %1841 = vxpose.xlu1.b32.end [4/4] (short) (narrow) %v1469_v5, 32  ;;  %1871 = vxpose.xlu0.b32.cont [2/4] (short) (narrow) %v1471_v21, 32  ;;  %v1475_v34 = vadd.f32 %v4994_v39, %v1443_v29  ;;  %v5824_v39 = vld [vmem:[#allocation8_spill] sm:$0xff] }
 0x14b   : > { %v3957_v18 = vpop.f32.mrf.mxu0 }
 0x14c   : > { %v1474_v17 = vadd.f32 %v1442_v31, %v4998_v41  ;;  %v1445_v35 = vsub.f32 %v3957_v18, %v5004_v48  ;;  %v5822_v41 = vld [vmem:[#allocation9_spill] sm:$0xff] }
 0x14d   : > { %v1341_v45 = vpop.f32.mrf.mxu0 }
 0x14e   : > { %1872 = vxpose.xlu0.b32.cont [3/4] (short) (narrow) %v1472_v26, 32  ;;  %1902 = vxpose.xlu1.b32.start [1/4] (short) (narrow) %v1474_v17, 32  ;;  %v1444_v40 = vsub.f32 %v1341_v45, %v5008_v58  ;;  %v1477_v58 = vadd.f32 %v5824_v39, %v1445_v35 }
 0x14f   : > { %v3960_v19 = vpop.f32.mrf.mxu0 }
 0x150   : > { %v1476_v38 = vadd.f32 %v1444_v40, %v5010_v59  ;;  %v1447_v56 = vsub.f32 %v3960_v19, %v5822_v41  ;;  %v5828_v59 = vld [vmem:[#allocation12_spill] sm:$0xff] }
 0x151   : > { %v1351_v51 = vpop.f32.mrf.mxu0 }
 0x152   : > { %v1446_v42 = vsub.f32 %v1351_v51, %v5020_v1  ;;  %1873 = vxpose.xlu0.b32.end [4/4] (short) (narrow) %v1473_v27, 32  ;;  %1903 = vxpose.xlu1.b32.cont [2/4] (short) (narrow) %v1475_v34, 32  ;;  %v1479_v54 = vadd.f32 %v5825_v52, %v1447_v56  ;;  %v5826_v1 = vld [vmem:[#allocation14_spill] sm:$0xff] }
 0x153   : > { %v3963_v32 = vpop.f32.mrf.mxu0 }
 0x154   : > { %v1478_v30 = vadd.f32 %v1446_v42, %v5823_v20  ;;  %v1449_v55 = vsub.f32 %v3963_v32, %v5828_v59 }
 0x155   : > { %v1361_v49 = vpop.f32.mrf.mxu0 }
 0x156   : > { %1904 = vxpose.xlu1.b32.cont [3/4] (short) (narrow) %v1476_v38, 32  ;;  %1934 = vxpose.xlu0.b32.start [1/4] (short) (narrow) %v1478_v30, 32  ;;  %v1448_v57 = vsub.f32 %v1361_v49, %v5826_v1  ;;  %v1481_v36 = vadd.f32 %v5832_v15, %v1449_v55 }
 0x157   : > { %v3966_v33 = vpop.f32.mrf.mxu0 }
 0x158   : > { %v1480_v12 = vadd.f32 %v1448_v57, %v5829_v62  ;;  %v1451_v2 = vsub.f32 %v3966_v33, %v5830_v0 }
 0x159   : > { %v1371_v23 = vpop.f32.mrf.mxu0 }
 0x15a   : > { %v1450_v50 = vsub.f32 %v1371_v23, %v5827_v43  ;;  %1905 = vxpose.xlu1.b32.end [4/4] (short) (narrow) %v1477_v58, 32  ;;  %1935 = vxpose.xlu0.b32.cont [2/4] (short) (narrow) %v1479_v54, 32  ;;  %v1483_v61 = vadd.f32 %v5833_v37, %v1451_v2 }
 0x15b   : > { %v3969_v48 = vpop.f32.mrf.mxu0 }
 0x15c   : > { %v1482_v63 = vadd.f32 %v1450_v50, %v5831_v60  ;;  %v1453_v7 = vsub.f32 %v3969_v48, %v5052_v53 }
 0x15d   : > { %v1381_v4 = vpop.f32.mrf.mxu0 }
 0x15e   : > { %1936 = vxpose.xlu0.b32.cont [3/4] (short) (narrow) %v1480_v12, 32  ;;  %1966 = vxpose.xlu1.b32.start [1/4] (short) (narrow) %v1482_v63, 32  ;;  %v1452_v6 = vsub.f32 %v1381_v4, %v5056_v25  ;;  %v5835_v25 = vld [vmem:[#allocation21_spill] sm:$0xff]  ;;  %v1485_v53 = vadd.f32 %v5054_v3, %v1453_v7 }
 0x160   : > { %v1484_v16 = vadd.f32 %v1452_v6, %v5834_v46 }
 0x161   : > { %v5135_v10 = vpop.trf.xlu0 }
 0x162   : > { %3978 = vmatprep.mubr.msk.f32.mxu1 %vm394_vm0, %v5135_v10  ;;  %1937 = vxpose.xlu0.b32.end [4/4] (short) (narrow) %v1481_v36, 32 }
 0x163   : > { %1967 = vxpose.xlu1.b32.cont [2/4] (short) (narrow) %v1483_v61, 32 }
 0x165   : > { %v5141_v8 = vpop.trf.xlu0 }
 0x166   : > { %3979 = vmatmul.mubr.msk.f32.vlgmr.msra.gmra.mxu1 %vm394_vm0, %v5141_v8 }
 0x167   : > { %1968 = vxpose.xlu1.b32.cont [3/4] (short) (narrow) %v1484_v16, 32  ;;  %4083 = vmatpush3.msra.mxu1 %v5835_v25 }
 0x168   : > { %4084 = vmatprep.subr.mxu1 %v328_v11 }
 0x169   : > { %v5153_v14 = vpop.trf.xlu0  ;;  %v5155_v44 = vpop.trf.xlu1  ;;  %4085 = vmatpush3.msra.mxu1 %v328_v11 }
 0x16a   : > { %3981 = vmatprep.mubr.msk.f32.mxu1 %vm394_vm0, %v5153_v14  ;;  %4086 = vmatprep.subr.mxu1 %v327_v13 }
 0x16b   : > { %1969 = vxpose.xlu1.b32.end [4/4] (short) (narrow) %v1485_v53, 32  ;;  %4087 = vmatpush3.msra.mxu1 %v327_v13 }
 0x16c   : > { %4088 = vmatprep.subr.mxu1 %v326_v47 }
 0x16d   : > { %v5162_v9 = vpop.trf.xlu0  ;;  %v5164_v5 = vpop.trf.xlu1  ;;  %4089 = vmatpush3.msra.mxu1 %v326_v47 }
 0x16e   : > { %3982 = vmatmul.mubr.msk.f32.gmra.mxu1 %vm394_vm0, %v5162_v9 }
 0x16f   : > { %3984 = vmatprep.mubr.msk.f32.mxu1 %vm394_vm0, %v5155_v44 }
 0x171   : > { %v5170_v3 = vpop.trf.xlu1  ;;  %v5172_v21 = vpop.trf.xlu0 }
 0x172   : > { %3985 = vmatmul.mubr.msk.f32.gmra.mxu1 %vm394_vm0, %v5164_v5 }
 0x173   : > { %3987 = vmatprep.mubr.msk.f32.mxu1 %vm394_vm0, %v5170_v3 }
 0x175   : > { %v5178_v28 = vpop.trf.xlu1  ;;  %v5180_v24 = vpop.trf.xlu0 }
 0x176   : > { %3988 = vmatmul.mubr.msk.f32.gmra.mxu1 %vm394_vm0, %v5178_v28 }
 0x177   : > { %3990 = vmatprep.mubr.msk.f32.mxu1 %vm394_vm0, %v5172_v21 }
 0x179   : > { %v5186_v31 = vpop.trf.xlu0  ;;  %v5188_v18 = vpop.trf.xlu1 }
 0x17a   : > { %3991 = vmatmul.mubr.msk.f32.gmra.mxu1 %vm394_vm0, %v5180_v24 }
 0x17b   : > { %3993 = vmatprep.mubr.msk.f32.mxu1 %vm394_vm0, %v5186_v31 }
 0x17d   : > { %v5194_v22 = vpop.trf.xlu0  ;;  %v5196_v26 = vpop.trf.xlu1 }
 0x17e   : > { %3994 = vmatmul.mubr.msk.f32.gmra.mxu1 %vm394_vm0, %v5194_v22 }
 0x17f   : > { %3996 = vmatprep.mubr.msk.f32.mxu1 %vm394_vm0, %v5188_v18 }
 0x181   : > { %v5202_v29 = vpop.trf.xlu1  ;;  %v5204_v17 = vpop.trf.xlu0 }
 0x182   : > { %3997 = vmatmul.mubr.msk.f32.gmra.mxu1 %vm394_vm0, %v5196_v26 }
 0x183   : > { %3999 = vmatprep.mubr.msk.f32.mxu1 %vm394_vm0, %v5202_v29 }
 0x185   : > { %v5210_v45 = vpop.trf.xlu1  ;;  %v5212_v19 = vpop.trf.xlu0 }
 0x186   : > { %4000 = vmatmul.mubr.msk.f32.gmra.mxu1 %vm394_vm0, %v5210_v45 }
 0x187   : > { %4002 = vmatprep.mubr.msk.f32.mxu1 %vm394_vm0, %v5204_v17 }
 0x189   : > { %v5218_v27 = vpop.trf.xlu0  ;;  %v5220_v34 = vpop.trf.xlu1 }
 0x18a   : > { %4003 = vmatmul.mubr.msk.f32.gmra.mxu1 %vm394_vm0, %v5212_v19 }
 0x18b   : > { %4005 = vmatprep.mubr.msk.f32.mxu1 %vm394_vm0, %v5218_v27 }
 0x18d   : > { %v5226_v40 = vpop.trf.xlu0  ;;  %v5228_v51 = vpop.trf.xlu1 }
 0x18e   : > { %4006 = vmatmul.mubr.msk.f32.gmra.mxu1 %vm394_vm0, %v5226_v40 }
 0x18f   : > { %4008 = vmatprep.mubr.msk.f32.mxu1 %vm394_vm0, %v5220_v34 }
 0x191   : > { %v5234_v42 = vpop.trf.xlu1  ;;  %v5236_v32 = vpop.trf.xlu0 }
 0x192   : > { %4009 = vmatmul.mubr.msk.f32.gmra.mxu1 %vm394_vm0, %v5228_v51 }
 0x193   : > { %4011 = vmatprep.mubr.msk.f32.mxu1 %vm394_vm0, %v5234_v42 }
 0x195   : > { %v5242_v35 = vpop.trf.xlu1  ;;  %v5244_v38 = vpop.trf.xlu0 }
 0x196   : > { %4012 = vmatmul.mubr.msk.f32.gmra.mxu1 %vm394_vm0, %v5242_v35 }
 0x197   : > { %4014 = vmatprep.mubr.msk.f32.mxu1 %vm394_vm0, %v5236_v32 }
 0x199   : > { %v5250_v41 = vpop.trf.xlu0  ;;  %v5252_v56 = vpop.trf.xlu1 }
 0x19a   : > { %4015 = vmatmul.mubr.msk.f32.gmra.mxu1 %vm394_vm0, %v5244_v38 }
 0x19b   : > { %4017 = vmatprep.mubr.msk.f32.mxu1 %vm394_vm0, %v5250_v41 }
 0x19d   : > { %v5258_v20 = vpop.trf.xlu0  ;;  %v5260_v30 = vpop.trf.xlu1 }
 0x19e   : > { %4018 = vmatmul.mubr.msk.f32.gmra.mxu1 %vm394_vm0, %v5258_v20 }
 0x19f   : > { %4020 = vmatprep.mubr.msk.f32.mxu1 %vm394_vm0, %v5252_v56 }
 0x1a1   : > { %v5266_v49 = vpop.trf.xlu1 }
 0x1a2   : > { %4021 = vmatmul.mubr.msk.f32.gmra.mxu1 %vm394_vm0, %v5260_v30  ;;  %v1758_v33 = vpop.trf.xlu0 }
 0x1a3   : > { %4023 = vmatprep.mubr.msk.f32.mxu1 %vm394_vm0, %v5266_v49  ;;  %v2640_v39 = vadd.f32 %v1758_v33, %v5135_v10  ;;  %4034 = vmatprep.mubr.msk.f32.mxu0 %vm394_vm0, %v1758_v33 }
 0x1a5   : > { %v5274_v58 = vpop.trf.xlu1 }
 0x1a6   : > { %4024 = vmatmul.mubr.msk.f32.gmra.mxu1 %vm394_vm0, %v5274_v58  ;;  %v1759_v52 = vpop.trf.xlu0 }
 0x1a7   : > { %4090 = vmatprep.mubr.msk.f32.mxu1 %vm394_vm0, %v2640_v39  ;;  %v2641_v54 = vadd.f32 %v1759_v52, %v5141_v8  ;;  %4035 = vmatmul.mubr.msk.f32.vlgmr.msra.gmra.mxu0 %vm394_vm0, %v1759_v52 }
 0x1aa   : > { %4091 = vmatmul.mubr.msk.f32.vlgmr.msra.gmra.mxu1 %vm394_vm0, %v2641_v54  ;;  %v1760_v1 = vpop.trf.xlu0  ;;  %v1790_v57 = vpop.trf.xlu1 }
 0x1ab   : > { %v2642_v23 = vadd.f32 %v1760_v1, %v5153_v14  ;;  %4037 = vmatprep.mubr.msk.f32.mxu0 %vm394_vm0, %v1760_v1  ;;  %v2644_v59 = vadd.f32 %v1790_v57, %v5155_v44 }
 0x1ad   : > { %4093 = vmatprep.mubr.msk.f32.mxu1 %vm394_vm0, %v2642_v23 }
 0x1ae   : > { %v1761_v43 = vpop.trf.xlu0  ;;  %v1791_v50 = vpop.trf.xlu1 }
 0x1af   : > { %v2643_v48 = vadd.f32 %v1761_v43, %v5162_v9  ;;  %4038 = vmatmul.mubr.msk.f32.gmra.mxu0 %vm394_vm0, %v1761_v43  ;;  %v2645_v12 = vadd.f32 %v1791_v50, %v5164_v5 }
 0x1b0   : > { %4040 = vmatprep.mubr.msk.f32.mxu0 %vm394_vm0, %v1790_v57 }
 0x1b1   : > { %4094 = vmatmul.mubr.msk.f32.gmra.mxu1 %vm394_vm0, %v2643_v48 }
 0x1b2   : > { %4096 = vmatprep.mubr.msk.f32.mxu1 %vm394_vm0, %v2644_v59  ;;  %v1792_v55 = vpop.trf.xlu1  ;;  %v1822_v62 = vpop.trf.xlu0 }
 0x1b3   : > { %v2646_v0 = vadd.f32 %v1792_v55, %v5170_v3  ;;  %4041 = vmatmul.mubr.msk.f32.gmra.mxu0 %vm394_vm0, %v1791_v50  ;;  %v2648_v4 = vadd.f32 %v1822_v62, %v5172_v21 }
 0x1b4   : > { %4043 = vmatprep.mubr.msk.f32.mxu0 %vm394_vm0, %v1792_v55 }
 0x1b5   : > { %4097 = vmatmul.mubr.msk.f32.gmra.mxu1 %vm394_vm0, %v2645_v12 }
 0x1b6   : > { %4099 = vmatprep.mubr.msk.f32.mxu1 %vm394_vm0, %v2646_v0  ;;  %v1793_v2 = vpop.trf.xlu1  ;;  %v1823_v60 = vpop.trf.xlu0 }
 0x1b7   : > { %v2647_v63 = vadd.f32 %v1793_v2, %v5178_v28  ;;  %4044 = vmatmul.mubr.msk.f32.gmra.mxu0 %vm394_vm0, %v1793_v2  ;;  %v2649_v37 = vadd.f32 %v1823_v60, %v5180_v24 }
 0x1b8   : > { %4046 = vmatprep.mubr.msk.f32.mxu0 %vm394_vm0, %v1822_v62 }
 0x1b9   : > { %4100 = vmatmul.mubr.msk.f32.gmra.mxu1 %vm394_vm0, %v2647_v63 }
 0x1ba   : > { %4102 = vmatprep.mubr.msk.f32.mxu1 %vm394_vm0, %v2648_v4  ;;  %v1824_v15 = vpop.trf.xlu0  ;;  %v1854_v36 = vpop.trf.xlu1 }
 0x1bb   : > { %v2650_v61 = vadd.f32 %v1824_v15, %v5186_v31  ;;  %4047 = vmatmul.mubr.msk.f32.gmra.mxu0 %vm394_vm0, %v1823_v60  ;;  %v2652_v46 = vadd.f32 %v1854_v36, %v5188_v18 }
 0x1bc   : > { %4049 = vmatprep.mubr.msk.f32.mxu0 %vm394_vm0, %v1824_v15 }
 0x1bd   : > { %4103 = vmatmul.mubr.msk.f32.gmra.mxu1 %vm394_vm0, %v2649_v37 }
 0x1be   : > { %4105 = vmatprep.mubr.msk.f32.mxu1 %vm394_vm0, %v2650_v61  ;;  %v1825_v6 = vpop.trf.xlu0  ;;  %v1855_v10 = vpop.trf.xlu1 }
 0x1bf   : > { %v2651_v7 = vadd.f32 %v1825_v6, %v5194_v22  ;;  %4050 = vmatmul.mubr.msk.f32.gmra.mxu0 %vm394_vm0, %v1825_v6  ;;  %v2653_v11 = vadd.f32 %v1855_v10, %v5196_v26 }
 0x1c0   : > { %4052 = vmatprep.mubr.msk.f32.mxu0 %vm394_vm0, %v1854_v36 }
 0x1c1   : > { %4106 = vmatmul.mubr.msk.f32.gmra.mxu1 %vm394_vm0, %v2651_v7 }
 0x1c2   : > { %4108 = vmatprep.mubr.msk.f32.mxu1 %vm394_vm0, %v2652_v46  ;;  %v1856_v16 = vpop.trf.xlu1  ;;  %v1886_v8 = vpop.trf.xlu0 }
 0x1c3   : > { %v2654_v25 = vadd.f32 %v1856_v16, %v5202_v29  ;;  %4053 = vmatmul.mubr.msk.f32.gmra.mxu0 %vm394_vm0, %v1855_v10  ;;  %v2656_v44 = vadd.f32 %v1886_v8, %v5204_v17 }
 0x1c4   : > { %4055 = vmatprep.mubr.msk.f32.mxu0 %vm394_vm0, %v1856_v16 }
 0x1c5   : > { %4109 = vmatmul.mubr.msk.f32.gmra.mxu1 %vm394_vm0, %v2653_v11 }
 0x1c6   : > { %4111 = vmatprep.mubr.msk.f32.mxu1 %vm394_vm0, %v2654_v25  ;;  %v1857_v13 = vpop.trf.xlu1  ;;  %v1887_v53 = vpop.trf.xlu0 }
 0x1c7   : > { %v2655_v14 = vadd.f32 %v1857_v13, %v5210_v45  ;;  %4056 = vmatmul.mubr.msk.f32.gmra.mxu0 %vm394_vm0, %v1857_v13  ;;  %v2657_v5 = vadd.f32 %v1887_v53, %v5212_v19 }
 0x1c8   : > { %4058 = vmatprep.mubr.msk.f32.mxu0 %vm394_vm0, %v1886_v8 }
 0x1c9   : > { %4112 = vmatmul.mubr.msk.f32.gmra.mxu1 %vm394_vm0, %v2655_v14 }
 0x1ca   : > { %4114 = vmatprep.mubr.msk.f32.mxu1 %vm394_vm0, %v2656_v44  ;;  %v1888_v47 = vpop.trf.xlu0  ;;  %v1918_v9 = vpop.trf.xlu1 }
 0x1cb   : > { %v2658_v3 = vadd.f32 %v1888_v47, %v5218_v27  ;;  %4059 = vmatmul.mubr.msk.f32.gmra.mxu0 %vm394_vm0, %v1887_v53  ;;  %v2660_v31 = vadd.f32 %v1918_v9, %v5220_v34 }
 0x1cc   : > { %4061 = vmatprep.mubr.msk.f32.mxu0 %vm394_vm0, %v1888_v47 }
 0x1cd   : > { %4115 = vmatmul.mubr.msk.f32.gmra.mxu1 %vm394_vm0, %v2657_v5 }
 0x1ce   : > { %4117 = vmatprep.mubr.msk.f32.mxu1 %vm394_vm0, %v2658_v3  ;;  %v1889_v21 = vpop.trf.xlu0  ;;  %v1919_v28 = vpop.trf.xlu1 }
 0x1cf   : > { %v2659_v24 = vadd.f32 %v1889_v21, %v5226_v40  ;;  %4062 = vmatmul.mubr.msk.f32.gmra.mxu0 %vm394_vm0, %v1889_v21  ;;  %v2661_v26 = vadd.f32 %v1919_v28, %v5228_v51 }
 0x1d0   : > { %4064 = vmatprep.mubr.msk.f32.mxu0 %vm394_vm0, %v1918_v9 }
 0x1d1   : > { %4118 = vmatmul.mubr.msk.f32.gmra.mxu1 %vm394_vm0, %v2659_v24 }
 0x1d2   : > { %4120 = vmatprep.mubr.msk.f32.mxu1 %vm394_vm0, %v2660_v31  ;;  %v1920_v18 = vpop.trf.xlu1  ;;  %v1950_v22 = vpop.trf.xlu0 }
 0x1d3   : > { %v2662_v29 = vadd.f32 %v1920_v18, %v5234_v42  ;;  %4065 = vmatmul.mubr.msk.f32.gmra.mxu0 %vm394_vm0, %v1919_v28  ;;  %v2664_v27 = vadd.f32 %v1950_v22, %v5236_v32 }
 0x1d4   : > { %4067 = vmatprep.mubr.msk.f32.mxu0 %vm394_vm0, %v1920_v18 }
 0x1d5   : > { %4121 = vmatmul.mubr.msk.f32.gmra.mxu1 %vm394_vm0, %v2661_v26 }
 0x1d6   : > { %4123 = vmatprep.mubr.msk.f32.mxu1 %vm394_vm0, %v2662_v29  ;;  %v1921_v17 = vpop.trf.xlu1  ;;  %v1951_v45 = vpop.trf.xlu0 }
 0x1d7   : > { %v2663_v19 = vadd.f32 %v1921_v17, %v5242_v35  ;;  %4068 = vmatmul.mubr.msk.f32.gmra.mxu0 %vm394_vm0, %v1921_v17  ;;  %v2665_v51 = vadd.f32 %v1951_v45, %v5244_v38 }
 0x1d8   : > { %4070 = vmatprep.mubr.msk.f32.mxu0 %vm394_vm0, %v1950_v22 }
 0x1d9   : > { %4124 = vmatmul.mubr.msk.f32.gmra.mxu1 %vm394_vm0, %v2663_v19 }
 0x1da   : > { %4126 = vmatprep.mubr.msk.f32.mxu1 %vm394_vm0, %v2664_v27  ;;  %v1952_v34 = vpop.trf.xlu0 }
 0x1db   : > { %v1982_v40 = vpop.trf.xlu1  ;;  %v2666_v42 = vadd.f32 %v1952_v34, %v5250_v41  ;;  %4071 = vmatmul.mubr.msk.f32.gmra.mxu0 %vm394_vm0, %v1951_v45 }
 0x1dc   : > { %4073 = vmatprep.mubr.msk.f32.mxu0 %vm394_vm0, %v1952_v34  ;;  %v2668_v39 = vadd.f32 %v1982_v40, %v5252_v56 }
 0x1dd   : > { %4127 = vmatmul.mubr.msk.f32.gmra.mxu1 %vm394_vm0, %v2665_v51 }
 0x1de   : > { %4129 = vmatprep.mubr.msk.f32.mxu1 %vm394_vm0, %v2666_v42  ;;  %v1953_v32 = vpop.trf.xlu0 }
 0x1df   : > { %v1983_v35 = vpop.trf.xlu1  ;;  %v2667_v33 = vadd.f32 %v1953_v32, %v5258_v20  ;;  %4074 = vmatmul.mubr.msk.f32.gmra.mxu0 %vm394_vm0, %v1953_v32 }
 0x1e0   : > { %4076 = vmatprep.mubr.msk.f32.mxu0 %vm394_vm0, %v1982_v40  ;;  %v2669_v41 = vadd.f32 %v1983_v35, %v5260_v30 }
 0x1e1   : > { %4130 = vmatmul.mubr.msk.f32.gmra.mxu1 %vm394_vm0, %v2667_v33 }
 0x1e2   : > { %4132 = vmatprep.mubr.msk.f32.mxu1 %vm394_vm0, %v2668_v39 }
 0x1e3   : > { %v1984_v38 = vpop.trf.xlu1  ;;  %4077 = vmatmul.mubr.msk.f32.gmra.mxu0 %vm394_vm0, %v1983_v35 }
 0x1e4   : > { %v2670_v52 = vadd.f32 %v1984_v38, %v5266_v49  ;;  %4079 = vmatprep.mubr.msk.f32.mxu0 %vm394_vm0, %v1984_v38 }
 0x1e5   : > { %4133 = vmatmul.mubr.msk.f32.gmra.mxu1 %vm394_vm0, %v2669_v41 }
 0x1e6   : > { %4135 = vmatprep.mubr.msk.f32.mxu1 %vm394_vm0, %v2670_v52 }
 0x1e7   : > { %v1985_v56 = vpop.trf.xlu1 }
 0x1e8   : > { %v2671_v20 = vadd.f32 %v1985_v56, %v5274_v58  ;;  %4080 = vmatmul.mubr.msk.f32.gmra.mxu0 %vm394_vm0, %v1985_v56 }
 0x1ea   : > { %4136 = vmatmul.mubr.msk.f32.gmra.mxu1 %vm394_vm0, %v2671_v20 }
 0x226   : > { %v5372_v54 = vpop.f32.mrf.mxu1 }
 0x228   : > { %v2160_v30 = vpop.f32.mrf.mxu1 }
 0x22e   : > { %v5374_v1 = vpop.f32.mrf.mxu1 }
 0x230   : > { %v5376_v49 = vpop.f32.mrf.mxu1 }
 0x232   : > { %v5378_v57 = vpop.f32.mrf.mxu1 }
 0x234   : > { %v5380_v23 = vpop.f32.mrf.mxu1 }
 0x236   : > { %v5382_v43 = vpop.f32.mrf.mxu1 }
 0x238   : > { %v5384_v50 = vpop.f32.mrf.mxu1 }
 0x23a   : > { %v5386_v58 = vpop.f32.mrf.mxu1 }
 0x23c   : > { %v5388_v48 = vpop.f32.mrf.mxu1 }
 0x23e   : > { %v5390_v59 = vpop.f32.mrf.mxu1 }
 0x240   : > { %v5392_v55 = vpop.f32.mrf.mxu1 }
 0x242   : > { %v5394_v62 = vpop.f32.mrf.mxu1 }
 0x244   : > { %v5396_v12 = vpop.f32.mrf.mxu1 }
 0x246   : > { %v5398_v0 = vpop.f32.mrf.mxu1 }
 0x248   : > { %v5400_v2 = vpop.f32.mrf.mxu1 }
 0x24a   : > { %v5402_v60 = vpop.f32.mrf.mxu1 }
 0x24c   : > { %v5404_v63 = vpop.f32.mrf.mxu1 }
 0x24e   : > { %v5406_v4 = vpop.f32.mrf.mxu1 }
 0x24f   : > { %5836 = vst [vmem:[#allocation9_spill] sm:$0xff] %v5406_v4 }
 0x250   : > { %v5408_v15 = vpop.f32.mrf.mxu1 }
 0x252   : > { %v5410_v36 = vpop.f32.mrf.mxu1 }
 0x253   : > { %5837 = vst [vmem:[#allocation11_spill] sm:$0xff] %v5410_v36 }
 0x254   : > { %v5412_v37 = vpop.f32.mrf.mxu1 }
 0x256   : > { %v5414_v61 = vpop.f32.mrf.mxu1 }
 0x258   : > { %v5416_v6 = vpop.f32.mrf.mxu1 }
 0x25a   : > { %v5418_v10 = vpop.f32.mrf.mxu1 }
 0x25c   : > { %v5420_v7 = vpop.f32.mrf.mxu1 }
 0x25e   : > { %v5422_v46 = vpop.f32.mrf.mxu1 }
 0x260   : > { %v5424_v16 = vpop.f32.mrf.mxu1 }
 0x262   : > { %v5426_v8 = vpop.f32.mrf.mxu1 }
 0x264   : > { %v5428_v11 = vpop.f32.mrf.mxu1 }
 0x266   : > { %v5430_v25 = vpop.f32.mrf.mxu1 }
 0x267   : > { %v5434_v53 = vpop.f32.mrf.mxu0 }
 0x268   : > { %v5432_v13 = vpop.f32.mrf.mxu1  ;;  %v2994_v3 = vsub.f32 %v5372_v54, %v5434_v53 }
 0x269   : > { %v2481_v14 = vpop.f32.mrf.mxu0 }
 0x26a   : > { %v5436_v44 = vpop.f32.mrf.mxu1  ;;  %v2993_v47 = vsub.f32 %v2160_v30, %v2481_v14 }
 0x26c   : > { %v2834_v9 = vpop.f32.mrf.mxu1  ;;  %3089 = vxpose.xlu0.b32.start [1/16] (narrow) %v2993_v47, 32 }
 0x26d   : > { %v3025_v5 = vsub.f32 %v2834_v9, %v2160_v30 }
 0x26f   : > { %v5440_v21 = vsub.f32 %v3025_v5, %v2481_v14  ;;  %v5442_v28 = vpop.f32.mrf.mxu0 }
 0x270   : > { %3090 = vxpose.xlu0.b32.cont [2/16] (narrow) %v2994_v3, 32  ;;  %v2996_v26 = vsub.f32 %v5374_v1, %v5442_v28 }
 0x271   : > { %v5444_v24 = vpop.f32.mrf.mxu0  ;;  %v5484_v52 = vpop.f32.mrf.mxu1 }
 0x272   : > { %v2995_v31 = vsub.f32 %v5376_v49, %v5444_v24 }
 0x273   : > { %v5448_v18 = vpop.f32.mrf.mxu0  ;;  %v2844_v47 = vpop.f32.mrf.mxu1 }
 0x274   : > { %3091 = vxpose.xlu0.b32.cont [3/16] (narrow) %v2995_v31, 32  ;;  %v2998_v34 = vsub.f32 %v5378_v57, %v5448_v18 }
 0x275   : > { %v5450_v22 = vpop.f32.mrf.mxu0  ;;  %v5500_v31 = vpop.f32.mrf.mxu1 }
 0x276   : > { %v2997_v45 = vsub.f32 %v5380_v23, %v5450_v22 }
 0x277   : > { %v5454_v29 = vpop.f32.mrf.mxu0 }
 0x278   : > { %3092 = vxpose.xlu0.b32.cont [4/16] (narrow) %v2996_v26, 32  ;;  %v3000_v33 = vsub.f32 %v5382_v43, %v5454_v29 }
 0x279   : > { %v5456_v17 = vpop.f32.mrf.mxu0 }
 0x27a   : > { %v2999_v42 = vsub.f32 %v5384_v50, %v5456_v17 }
 0x27b   : > { %v5460_v19 = vpop.f32.mrf.mxu0 }
 0x27c   : > { %3093 = vxpose.xlu0.b32.cont [5/16] (narrow) %v2997_v45, 32  ;;  %v3002_v30 = vsub.f32 %v5386_v58, %v5460_v19 }
 0x27d   : > { %v5462_v27 = vpop.f32.mrf.mxu0 }
 0x27e   : > { %v3001_v41 = vsub.f32 %v5388_v48, %v5462_v27 }
 0x27f   : > { %v5466_v40 = vpop.f32.mrf.mxu0 }
 0x280   : > { %3094 = vxpose.xlu0.b32.cont [6/16] (narrow) %v2998_v34, 32  ;;  %v3004_v45 = vsub.f32 %v5390_v59, %v5466_v40 }
 0x281   : > { %v5468_v51 = vpop.f32.mrf.mxu0 }
 0x282   : > { %v3003_v5 = vsub.f32 %v5392_v55, %v5468_v51 }
 0x283   : > { %v5472_v32 = vpop.f32.mrf.mxu0 }
 0x284   : > { %3095 = vxpose.xlu0.b32.cont [7/16] (narrow) %v2999_v42, 32  ;;  %v2854_v42 = vpop.f32.mrf.mxu1 }
 0x285   : > { %v5474_v35 = vpop.f32.mrf.mxu0 }
 0x286   : > { %5838 = vst [vmem:[#allocation8_spill] sm:$0xff] %v5474_v35 }
 0x287   : > { %v5478_v39 = vpop.f32.mrf.mxu0 }
 0x288   : > { %5839 = vst [vmem:[#allocation10_spill] sm:$0xff] %v5478_v39  ;;  %3096 = vxpose.xlu0.b32.cont [8/16] (narrow) %v3000_v33, 32 }
 0x289   : > { %v5480_v38 = vpop.f32.mrf.mxu0 }
 0x28a   : > { %5840 = vst [vmem:[#allocation14_spill] sm:$0xff] %v5480_v38 }
 0x28b   : > { %v5486_v56 = vpop.f32.mrf.mxu0 }
 0x28c   : > { %3097 = vxpose.xlu0.b32.cont [9/16] (narrow) %v3001_v41, 32  ;;  %v3010_v3 = vsub.f32 %v5402_v60, %v5486_v56  ;;  %v3005_v41 = vsub.f32 %v5396_v12, %v5474_v35 }
 0x28d   : > { %v5488_v20 = vpop.f32.mrf.mxu0 }
 0x28e   : > { %v3009_v14 = vsub.f32 %v5404_v63, %v5488_v20 }
 0x28f   : > { %v5494_v9 = vpop.f32.mrf.mxu0 }
 0x290   : > { %5841 = vst [vmem:[#allocation18_spill] sm:$0xff] %v5494_v9  ;;  %3098 = vxpose.xlu0.b32.cont [10/16] (narrow) %v3002_v30, 32  ;;  %3121 = vxpose.xlu1.b32.start [1/16] (narrow) %v3009_v14, 32  ;;  %v3012_v30 = vsub.f32 %v5406_v4, %v5494_v9  ;;  %v5514_v14 = vpop.f32.mrf.mxu1  ;;  %v3007_v9 = vsub.f32 %v5400_v2, %v5480_v38 }
 0x291   : > { %v5502_v26 = vpop.f32.mrf.mxu0 }
 0x292   : > { %5842 = vst [vmem:[#allocation12_spill] sm:$0xff] %v5502_v26  ;;  %v3011_v34 = vsub.f32 %v5408_v15, %v5502_v26 }
 0x293   : > { %v5508_v33 = vpop.f32.mrf.mxu0 }
 0x294   : > { %3099 = vxpose.xlu0.b32.cont [11/16] (narrow) %v3003_v5, 32  ;;  %3122 = vxpose.xlu1.b32.cont [2/16] (narrow) %v3010_v3, 32  ;;  %5843 = vst [vmem:[#allocation15_spill] sm:$0xff] %v5508_v33  ;;  %v3006_v3 = vsub.f32 %v5394_v62, %v5472_v32  ;;  %v3014_v35 = vsub.f32 %v5410_v36, %v5508_v33 }
 0x295   : > { %v5516_v5 = vpop.f32.mrf.mxu0  ;;  %v3026_v33 = vsub.f32 %v5436_v44, %v5372_v54  ;;  %v3028_v54 = vsub.f32 %v5484_v52, %v5374_v1 }
 0x296   : > { %5844 = vst [vmem:[#allocation16_spill] sm:$0xff] %v5516_v5  ;;  %v3013_v26 = vsub.f32 %v5412_v37, %v5516_v5 }
 0x298   : > { %3100 = vxpose.xlu0.b32.cont [12/16] (narrow) %v3004_v45, 32  ;;  %3123 = vxpose.xlu1.b32.cont [3/16] (narrow) %v3011_v34, 32  ;;  %v2864_v45 = vpop.f32.mrf.mxu1  ;;  %v5522_v34 = vpop.f32.mrf.mxu0 }
 0x299   : > { %v3016_v38 = vsub.f32 %v5414_v61, %v5522_v34 }
 0x29a   : > { %v5528_v4 = vpop.f32.mrf.mxu1 }
 0x29c   : > { %3101 = vxpose.xlu0.b32.cont [13/16] (narrow) %v3005_v41, 32  ;;  %3124 = vxpose.xlu1.b32.cont [4/16] (narrow) %v3012_v30, 32  ;;  %v5530_v41 = vpop.f32.mrf.mxu0  ;;  %v3008_v30 = vsub.f32 %v5398_v0, %v5478_v39 }
 0x29d   : > { %5845 = vst [vmem:[#allocation19_spill] sm:$0xff] %v5530_v41  ;;  %v3015_v5 = vsub.f32 %v5416_v6, %v5530_v41  ;;  %v3027_v41 = vsub.f32 %v2844_v47, %v5376_v49  ;;  %v3060_v49 = vsub.f32 %v3028_v54, %v5442_v28  ;;  %v3029_v47 = vsub.f32 %v2854_v42, %v5380_v23 }
 0x29e   : > { %v3031_v42 = vsub.f32 %v2864_v45, %v5384_v50 }
 0x29f   : > { %v3059_v44 = vsub.f32 %v3027_v41, %v5444_v24  ;;  %v3030_v24 = vsub.f32 %v5500_v31, %v5378_v57  ;;  %v3061_v52 = vsub.f32 %v3029_v47, %v5450_v22  ;;  %v3032_v22 = vsub.f32 %v5514_v14, %v5382_v43 }
 0x2a0   : > { %3102 = vxpose.xlu0.b32.cont [14/16] (narrow) %v3006_v3, 32  ;;  %3125 = vxpose.xlu1.b32.cont [5/16] (narrow) %v3013_v26, 32  ;;  %v2874_v3 = vpop.f32.mrf.mxu1  ;;  %v5536_v26 = vpop.f32.mrf.mxu0  ;;  %v3063_v31 = vsub.f32 %v3031_v42, %v5456_v17  ;;  %v3034_v43 = vsub.f32 %v5528_v4, %v5386_v58 }
 0x2a1   : > { %v3062_v23 = vsub.f32 %v3030_v24, %v5448_v18  ;;  %v3064_v50 = vsub.f32 %v3032_v22, %v5454_v29  ;;  %v3033_v45 = vsub.f32 %v2874_v3, %v5388_v48 }
 0x2a2   : > { %v5542_v36 = vpop.f32.mrf.mxu1  ;;  %v3066_v48 = vsub.f32 %v3034_v43, %v5460_v19  ;;  %v5846_v19 = vld [vmem:[#allocation9_spill] sm:$0xff]  ;;  %v5854_v43 = vld [vmem:[#allocation10_spill] sm:$0xff] }
 0x2a3   : > { %v3065_v17 = vsub.f32 %v3033_v45, %v5462_v27  ;;  %v3036_v58 = vsub.f32 %v5542_v36, %v5390_v59  ;;  %v5848_v36 = vld [vmem:[#allocation8_spill] sm:$0xff] }
 0x2a4   : > { %3103 = vxpose.xlu0.b32.cont [15/16] (narrow) %v3007_v9, 32  ;;  %3126 = vxpose.xlu1.b32.cont [6/16] (narrow) %v3014_v35, 32  ;;  %v5544_v35 = vpop.f32.mrf.mxu0  ;;  %v3058_v9 = vsub.f32 %v3026_v33, %v5434_v53 }
 0x2a6   : > { %v5551_v39 = vpop.f32.mrf.mxu0 }
 0x2a7   : > { %v3020_v41 = vsub.f32 %v5422_v46, %v5551_v39 }
 0x2a8   : > { %3104 = vxpose.xlu0.b32.end [16/16] (narrow) %v3008_v30, 32  ;;  %3127 = vxpose.xlu1.b32.cont [7/16] (narrow) %v3015_v5, 32  ;;  %v3017_v5 = vsub.f32 %v5420_v7, %v5544_v35  ;;  %v2884_v30 = vpop.f32.mrf.mxu1  ;;  %v5560_v53 = vpop.f32.mrf.mxu0 }
 0x2a9   : > { %v3019_v33 = vsub.f32 %v5424_v16, %v5560_v53  ;;  %v3035_v29 = vsub.f32 %v2884_v30, %v5392_v55  ;;  %v3068_v55 = vsub.f32 %v3036_v58, %v5466_v40  ;;  %v5847_v30 = vld [vmem:[#allocation12_spill] sm:$0xff] }
 0x2aa   : > { %v5566_v1 = vpop.f32.mrf.mxu0 }
 0x2ac   : > { %3161 = vxpose.xlu0.b32.start [1/16] (narrow) %v5440_v21, 32  ;;  %3128 = vxpose.xlu1.b32.cont [8/16] (narrow) %v3016_v38, 32  ;;  %v3018_v21 = vsub.f32 %v5418_v10, %v5536_v26  ;;  %v5558_v38 = vpop.f32.mrf.mxu1  ;;  %v5575_v28 = vpop.f32.mrf.mxu0 }
 0x2ad   : > { %v3021_v54 = vsub.f32 %v5428_v11, %v5575_v28  ;;  %v3038_v59 = vsub.f32 %v5558_v38, %v5394_v62 }
 0x2ae   : > { %v5581_v57 = vpop.f32.mrf.mxu0 }
 0x2af   : > { %v3024_v24 = vsub.f32 %v5430_v25, %v5581_v57 }
 0x2b0   : > { %3162 = vxpose.xlu0.b32.cont [2/16] (narrow) %v3058_v9, 32  ;;  %3129 = vxpose.xlu1.b32.cont [9/16] (narrow) %v3017_v5, 32  ;;  %v2894_v9 = vpop.f32.mrf.mxu1  ;;  %v5588_v18 = vpop.f32.mrf.mxu0 }
 0x2b1   : > { %v3023_v47 = vsub.f32 %v5432_v13, %v5588_v18 }
 0x2b2   : > { %v5573_v5 = vpop.f32.mrf.mxu1 }
 0x2b3   : > { %v3040_v62 = vsub.f32 %v5573_v5, %v5398_v0 }
 0x2b4   : > { %3163 = vxpose.xlu0.b32.cont [3/16] (narrow) %v3059_v44, 32  ;;  %3130 = vxpose.xlu1.b32.cont [10/16] (narrow) %v3018_v21, 32  ;;  %v2904_v44 = vpop.f32.mrf.mxu1  ;;  %v3022_v21 = vsub.f32 %v5426_v8, %v5566_v1 }
 0x2b8   : > { %3164 = vxpose.xlu0.b32.cont [4/16] (narrow) %v3060_v49, 32  ;;  %3131 = vxpose.xlu1.b32.cont [11/16] (narrow) %v3019_v33, 32  ;;  %v4116_v49 = vpop.f32.mrf.mxu1 }
 0x2b9   : > { %v3042_v3 = vsub.f32 %v4116_v49, %v5402_v60  ;;  %v3037_v60 = vsub.f32 %v2894_v9, %v5396_v12  ;;  %v3070_v12 = vsub.f32 %v3038_v59, %v5472_v32  ;;  %v3039_v9 = vsub.f32 %v2904_v44, %v5400_v2 }
 0x2ba   : > { %v2914_v33 = vpop.f32.mrf.mxu1 }
 0x2bb   : > { %v3041_v14 = vsub.f32 %v2914_v33, %v5404_v63  ;;  %v3067_v63 = vsub.f32 %v3035_v29, %v5468_v51  ;;  %v3074_v4 = vsub.f32 %v3042_v3, %v5486_v56  ;;  %v5849_v51 = vld [vmem:[#allocation18_spill] sm:$0xff]  ;;  %v5853_v33 = vld [vmem:[#allocation15_spill] sm:$0xff] }
 0x2bc   : > { %3165 = vxpose.xlu0.b32.cont [5/16] (narrow) %v3061_v52, 32  ;;  %3132 = vxpose.xlu1.b32.cont [12/16] (narrow) %v3020_v41, 32  ;;  %v4119_v52 = vpop.f32.mrf.mxu1 }
 0x2bd   : > { %v3073_v41 = vsub.f32 %v3041_v14, %v5488_v20  ;;  %v3044_v20 = vsub.f32 %v4119_v52, %v5846_v19 }
 0x2bf   : > { %v3076_v56 = vsub.f32 %v3044_v20, %v5849_v51 }
 0x2c0   : > { %3166 = vxpose.xlu0.b32.cont [6/16] (narrow) %v3062_v23, 32  ;;  %3133 = vxpose.xlu1.b32.cont [13/16] (narrow) %v3021_v54, 32  ;;  %v2924_v23 = vpop.f32.mrf.mxu1 }
 0x2c1   : > { %v3043_v27 = vsub.f32 %v2924_v23, %v5408_v15  ;;  %v3069_v15 = vsub.f32 %v3037_v60, %v5848_v36 }
 0x2c2   : > { %v4122_v42 = vpop.f32.mrf.mxu1 }
 0x2c3   : > { %v3075_v54 = vsub.f32 %v3043_v27, %v5847_v30 }
 0x2c4   : > { %3167 = vxpose.xlu0.b32.cont [7/16] (narrow) %v3063_v31, 32  ;;  %3134 = vxpose.xlu1.b32.cont [14/16] (narrow) %v3022_v21, 32  ;;  %v2934_v22 = vpop.f32.mrf.mxu1  ;;  %v5850_v21 = vld [vmem:[#allocation11_spill] sm:$0xff] }
 0x2c5   : > { %v3045_v31 = vsub.f32 %v2934_v22, %v5412_v37  ;;  %v3046_v49 = vsub.f32 %v4122_v42, %v5850_v21  ;;  %v5852_v37 = vld [vmem:[#allocation14_spill] sm:$0xff] }
 0x2c6   : > { %v4125_v40 = vpop.f32.mrf.mxu1  ;;  %v3071_v38 = vsub.f32 %v3039_v9, %v5852_v37 }
 0x2c7   : > { %v3078_v32 = vsub.f32 %v3046_v49, %v5853_v33  ;;  %v3048_v14 = vsub.f32 %v4125_v40, %v5414_v61 }
 0x2c8   : > { %3168 = vxpose.xlu0.b32.cont [8/16] (narrow) %v3064_v50, 32  ;;  %3135 = vxpose.xlu1.b32.cont [15/16] (narrow) %v3023_v47, 32  ;;  %v5851_v50 = vld [vmem:[#allocation16_spill] sm:$0xff]  ;;  %v2944_v47 = vpop.f32.mrf.mxu1 }
 0x2c9   : > { %v3077_v45 = vsub.f32 %v3045_v31, %v5851_v50  ;;  %v3047_v2 = vsub.f32 %v2944_v47, %v5416_v6  ;;  %v3080_v6 = vsub.f32 %v3048_v14, %v5522_v34 }
 0x2ca   : > { %v4128_v44 = vpop.f32.mrf.mxu1 }
 0x2cb   : > { %v3050_v3 = vsub.f32 %v4128_v44, %v5418_v10 }
 0x2cc   : > { %3169 = vxpose.xlu0.b32.cont [9/16] (narrow) %v3065_v17, 32  ;;  %3136 = vxpose.xlu1.b32.end [16/16] (narrow) %v3024_v24, 32  ;;  %v3072_v17 = vsub.f32 %v3040_v62, %v5854_v43  ;;  %v5855_v24 = vld [vmem:[#allocation19_spill] sm:$0xff] }
 0x2cd   : > { %v3079_v52 = vsub.f32 %v3047_v2, %v5855_v24 }
 0x2d0   : > { %3170 = vxpose.xlu0.b32.cont [10/16] (narrow) %v3066_v48, 32  ;;  %3193 = vxpose.xlu1.b32.start [1/16] (narrow) %v3073_v41, 32  ;;  %v2954_v48 = vpop.f32.mrf.mxu1 }
 0x2d1   : > { %v3049_v5 = vsub.f32 %v2954_v48, %v5420_v7 }
 0x2d2   : > { %v4131_v29 = vpop.f32.mrf.mxu1 }
 0x2d3   : > { %v3081_v41 = vsub.f32 %v3049_v5, %v5544_v35  ;;  %v3052_v27 = vsub.f32 %v4131_v29, %v5422_v46 }
 0x2d4   : > { %3171 = vxpose.xlu0.b32.cont [11/16] (narrow) %v3067_v63, 32  ;;  %3194 = vxpose.xlu1.b32.cont [2/16] (narrow) %v3074_v4, 32  ;;  %v2964_v23 = vpop.f32.mrf.mxu1  ;;  %v3082_v63 = vsub.f32 %v3050_v3, %v5536_v26 }
 0x2d5   : > { %v3051_v4 = vsub.f32 %v2964_v23, %v5424_v16  ;;  %v3084_v10 = vsub.f32 %v3052_v27, %v5551_v39 }
 0x2d6   : > { %v4134_v34 = vpop.f32.mrf.mxu1 }
 0x2d7   : > { %v3083_v42 = vsub.f32 %v3051_v4, %v5560_v53  ;;  %v3054_v16 = vsub.f32 %v4134_v34, %v5426_v8 }
 0x2d8   : > { %3172 = vxpose.xlu0.b32.cont [12/16] (narrow) %v3068_v55, 32  ;;  %3195 = vxpose.xlu1.b32.cont [3/16] (narrow) %v3075_v54, 32  ;;  %v2974_v55 = vpop.f32.mrf.mxu1 }
 0x2d9   : > { %v3053_v35 = vsub.f32 %v2974_v55, %v5428_v11  ;;  %v3086_v46 = vsub.f32 %v3054_v16, %v5566_v1 }
 0x2da   : > { %v4137_v60 = vpop.f32.mrf.mxu1 }
 0x2db   : > { %v3085_v26 = vsub.f32 %v3053_v35, %v5575_v28  ;;  %v3056_v11 = vsub.f32 %v4137_v60, %v5430_v25 }
 0x2dc   : > { %3173 = vxpose.xlu0.b32.cont [13/16] (narrow) %v3069_v15, 32  ;;  %3196 = vxpose.xlu1.b32.cont [4/16] (narrow) %v3076_v56, 32  ;;  %v2984_v19 = vpop.f32.mrf.mxu1 }
 0x2dd   : > { %v3055_v53 = vsub.f32 %v2984_v19, %v5432_v13  ;;  %v3088_v8 = vsub.f32 %v3056_v11, %v5581_v57 }
 0x2df   : > { %v3087_v39 = vsub.f32 %v3055_v53, %v5588_v18 }
 0x2e0   : > { %3174 = vxpose.xlu0.b32.cont [14/16] (narrow) %v3070_v12, 32  ;;  %3197 = vxpose.xlu1.b32.cont [5/16] (narrow) %v3077_v45, 32 }
 0x2e4   : > { %3175 = vxpose.xlu0.b32.cont [15/16] (narrow) %v3071_v38, 32  ;;  %3198 = vxpose.xlu1.b32.cont [6/16] (narrow) %v3078_v32, 32 }
 0x2e8   : > { %3176 = vxpose.xlu0.b32.end [16/16] (narrow) %v3072_v17, 32  ;;  %3199 = vxpose.xlu1.b32.cont [7/16] (narrow) %v3079_v52, 32  ;;  %v3105_v0 = vpop.trf.xlu0 }
 0x2e9   : > { %3153 = vst [vmem:[%s5636_s13] sm:$0xff] %v3105_v0 }
 0x2ec   : > { %3200 = vxpose.xlu1.b32.cont [8/16] (narrow) %v3080_v6, 32  ;;  %v3106_v61 = vpop.trf.xlu0 }
 0x2ed   : > { %3155 = vst [vmem:[%s5636_s13 + $0x10] sm:$0xff] %v3106_v61 }
 0x2f0   : > { %3201 = vxpose.xlu1.b32.cont [9/16] (narrow) %v3081_v41, 32  ;;  %v3107_v58 = vpop.trf.xlu0 }
 0x2f1   : > { %3157 = vst [vmem:[%s5636_s13 + $0x20] sm:$0xff] %v3107_v58 }
 0x2f4   : > { %3202 = vxpose.xlu1.b32.cont [10/16] (narrow) %v3082_v63, 32  ;;  %v3108_v7 = vpop.trf.xlu0 }
 0x2f5   : > { %3159 = vst [vmem:[%s5636_s13 + $0x30] sm:$0xff] %v3108_v7 }
 0x2f8   : > { %3203 = vxpose.xlu1.b32.cont [11/16] (narrow) %v3083_v42, 32 }
 0x2fc   : > { %3204 = vxpose.xlu1.b32.cont [12/16] (narrow) %v3084_v10, 32 }
 0x300   : > { %3205 = vxpose.xlu1.b32.cont [13/16] (narrow) %v3085_v26, 32 }
 0x304   : > { %3206 = vxpose.xlu1.b32.cont [14/16] (narrow) %v3086_v46, 32 }
 0x308   : > { %3207 = vxpose.xlu1.b32.cont [15/16] (narrow) %v3087_v39, 32 }
 0x30c   : > { %3208 = vxpose.xlu1.b32.end [16/16] (narrow) %v3088_v8, 32  ;;  %v3137_v28 = vpop.trf.xlu1 }
 0x30d   : > { %3154 = vst [vmem:[%s5636_s13 + $0x8] sm:$0xff] %v3137_v28 }
 0x310   : > { %v3138_v20 = vpop.trf.xlu1 }
 0x311   : > { %3156 = vst [vmem:[%s5636_s13 + $0x18] sm:$0xff] %v3138_v20 }
 0x314   : > { %v3139_v13 = vpop.trf.xlu1 }
 0x315   : > { %3158 = vst [vmem:[%s5636_s13 + $0x28] sm:$0xff] %v3139_v13 }
 0x318   : > { %v3140_v25 = vpop.trf.xlu1 }
 0x319   : > { %3160 = vst [vmem:[%s5636_s13 + $0x38] sm:$0xff] %v3140_v25 }
 0x31a   : > { %4199 = shalt.err (!%p4196_p3)
}
 0x31b   : > { %s4200_s29 = scalar_lea.hbm %s5671_s18, 1024  ;;  %s4204_s17 = scalar_lea.hbm %s5758_s6, 2048 }
 0x31c   : > { %p4201_p4 = scmp.ne.s32.totalorder %s5671_s18, %s4200_s29  ;;  %p4205_p9 = scmp.lt.s32.totalorder %s5671_s18, %s5758_s6 }
 0x31d   : > { %p4206_p10 = scmp.lt.s32.totalorder %s4204_s17, %s4200_s29 }
 0x31e   : > { %p4202_p7 = pnand %p4201_p4, %p4361_p5 }
 0x31f   : > { %p4207_p11 = por %p4206_p10, %p4205_p9 }
 0x320   : > { %p4203_p8 = pneg %p4202_p7 }
 0x322   : > { %p4208_p12 = pnand %p4207_p11, %p4203_p8 }
 0x324   : > { %4211 = shalt.err (!%p4208_p12)
}
 0x325   : > { %s4279_s21 = smov 256   ;;  %s4280_s23 = smov 512  }
 0x326   : > { %s4281_s19 = smov 16   ;;  %s299_s15 = scalar_lea.vmem [#allocation4], %s3378_s9 }
 0x327   : > { %4138 = dma.vmem_to_hbm [thread:$0]  (%p4361_p5), %s5663_s14, 1024, %s5671_s18, %s3234_s20, %s4279_s21, %s4280_s23, %s4281_s19  }
 0x328   : > { %v3177_v1 = vpop.trf.xlu0  ;;  %s3268_s29 = sshll.u32 %s299_s15, 4  ;;  %s5856_s9 = sshll.u32 %s4344_s28, 8  ;;  %s5702_s29 = int_to_ptr.vmem [resolvable:$true] %s3268_s29 }
 0x329   : > { %3225 = vst [vmem:[%s299_s15] sm:$0xff] %v3177_v1  ;;  %s5709_s20 = scalar_lea.hbm %s5759_s7, %s5856_s9  ;;  %s3239_s13 = scalar_lea.sflag [#allocation5], %s5623_s8 }
 0x32a   : > { %s4212_s16 = scalar_lea.vmem %s5702_s29, 1024  ;;  %s4282_s17 = smov [#allocation4]  }
 0x32b   : > { %p4213_p13 = scmp.ne.s32.totalorder %s5702_s29, %s4212_s16  ;;  %s4216_s22 = sshll.u32 %s4282_s17, 4  ;;  %s4217_s22 = int_to_ptr.vmem [resolvable:$false] %s4216_s22 }
 0x32c   : > { %v3178_v57 = vpop.trf.xlu0  ;;  %s4218_s28 = scalar_lea.vmem %s4217_s22, 2048  ;;  %p4219_p2 = scmp.lt.s32.totalorder %s5702_s29, %s4217_s22 }
 0x32d   : > { %3227 = vst [vmem:[%s299_s15 + $0x10] sm:$0xff] %v3178_v57  ;;  %p4214_p0 = pnand %p4213_p13, %p4361_p5  ;;  %p4220_p3 = scmp.lt.s32.totalorder %s4218_s28, %s4212_s16 }
 0x32f   : > { %p4215_p1 = pneg %p4214_p0  ;;  %p4221_p4 = por %p4220_p3, %p4219_p2 }
 0x330   : > { %v3179_v18 = vpop.trf.xlu0 }
 0x331   : > { %3229 = vst [vmem:[%s299_s15 + $0x20] sm:$0xff] %v3179_v18  ;;  %p4222_p7 = pnand %p4221_p4, %p4215_p1 }
 0x334   : > { %v3180_v30 = vpop.trf.xlu0 }
 0x335   : > { %3231 = vst [vmem:[%s299_s15 + $0x30] sm:$0xff] %v3180_v30 }
 0x34c   : > { %v3209_v54 = vpop.trf.xlu1 }
 0x34d   : > { %3226 = vst [vmem:[%s299_s15 + $0x8] sm:$0xff] %v3209_v54 }
 0x350   : > { %v3210_v22 = vpop.trf.xlu1 }
 0x351   : > { %3228 = vst [vmem:[%s299_s15 + $0x18] sm:$0xff] %v3210_v22 }
 0x354   : > { %v3211_v59 = vpop.trf.xlu1 }
 0x355   : > { %3230 = vst [vmem:[%s299_s15 + $0x28] sm:$0xff] %v3211_v59 }
 0x358   : > { %v3212_v36 = vpop.trf.xlu1 }
 0x359   : > { %3232 = vst [vmem:[%s299_s15 + $0x38] sm:$0xff] %v3212_v36 }
 0x35a   : > { %4225 = shalt.err (!%p4222_p7)
}
 0x35b   : > { %s4226_s15 = scalar_lea.hbm %s5709_s20, 1024  ;;  %s4230_s14 = scalar_lea.hbm %s5759_s7, 2048 }
 0x35c   : > { %p4227_p8 = scmp.ne.s32.totalorder %s5709_s20, %s4226_s15  ;;  %p4231_p11 = scmp.lt.s32.totalorder %s5709_s20, %s5759_s7 }
 0x35d   : > { %p4232_p12 = scmp.lt.s32.totalorder %s4230_s14, %s4226_s15 }
 0x35e   : > { %p4228_p9 = pnand %p4227_p8, %p4361_p5 }
 0x35f   : > { %p4233_p13 = por %p4232_p12, %p4231_p11 }
 0x360   : > { %p4229_p10 = pneg %p4228_p9 }
 0x362   : > { %p4234_p0 = pnand %p4233_p13, %p4229_p10 }
 0x364   : > { %4237 = shalt.err (!%p4234_p0)
}
 0x365   : > { %4139 = dma.vmem_to_hbm [thread:$0]  (%p4361_p5), %s5702_s29, 1024, %s5709_s20, %s3239_s13, %s4279_s21, %s4280_s23, %s4281_s19  }
 0x366 PF: > { %p4149_p1 = scmp.ge.s32.totalorder %s4276_s27, 2  ;;  %s3283_s16 = sand.u32 1, %s4264_s24  }
 0x367   : > { %s3284_s22 = scalar_lea.sflag [#allocation3], %s3283_s16 }
 0x368   : > { %p4143_p2 = pnand %p4149_p1, %p4365_p6 }
 0x36a   : > { %p4144_p3 = pneg %p4143_p2 }
 0x36c   : > { %4255 = dma.done.wait (%p4144_p3), %s3284_s22, 1024  }
 0x36d   : > { %4257 = vsyncadd (%p4144_p3), %s3284_s22, 4294966272  ;;  %s3293_s28 = scalar_lea.sflag [#allocation5], %s3283_s16 }
 0x36e   : > { %4259 = dma.done.wait (%p4144_p3), %s3293_s28, 1024  }
 0x36f   : > { %4261 = vsyncadd (%p4144_p3), %s3293_s28, 4294966272  ;;  %p21_p5 = scmp.ge.s32.totalorder %s4348_s30, 4   ;;  %s5857_s24 = smov %s4268_s25 }
 0x370   : > { %s5858_s25 = smov %s4272_s26  ;;  %s5859_s26 = smov %s4359_s10 }
 0x371   : > { %s5860_s27 = smov %s4348_s30  ;;  %23 = sbr.rel (!%p21_p5) target bundleno = 5 (0x5), region = 99 }
 0x376   :  { %3298 = vsyncpa [#allocation3], 1 }
 0x377   :  { %3300 = vsyncpa [#allocation3 + $0x1], 1 }
 0x378   :  { %3301 = vsyncpa [#allocation5], 1 }
 0x379   :  { %3303 = vsyncpa [#allocation5 + $0x1], 1 }

</bundles_post_ra>
